<compile_context>
chip_gen: v6e
topology: v6e:2x2x1
jax: 0.10.0
libtpu: 0.0.40
codegen_flags: <defaults>
</compile_context>

<pallas_src>
import math

import jax
import jax.numpy as jnp
from jax.experimental import pallas as pl
from jax.experimental.pallas import tpu as pltpu

EPS = 1e-05
NEG_SLOPE = 0.01                    # PyTorch LeakyReLU default
LOG_EPS = math.log(EPS)
LOG_ONE_MINUS_EPS = math.log1p(-EPS)


def _pick_block_batch(B, D, V):
    """Largest divisor of B whose (Bblk*D, V) f32 logits tile stays well inside VMEM."""
    # Budget ~4 live (rows, V) f32 temporaries under 8 MiB -> safe even on v7x (64 MiB VMEM).
    max_rows = max(D, (8 << 20) // (V * 4 * 4))
    bb = B
    while bb > 1 and (B % bb != 0 or bb * D > max_rows):
        bb -= 1
    if bb != B and (bb * D) % 8 != 0:
        bb = B      # partial-batch blocks need sublane-tile (8) divisible row counts
    return bb


def arm_forward_pallas(x, w1, b1, w2, b2, w3, b3):
    """-mean_b sum_d log(clamp(softmax(net(x))[b, d, x[b, d]], EPS, 1-EPS))."""
    B, D = x.shape
    K, M = w1.shape
    V = w3.shape[-1]

    bb = _pick_block_batch(B, D, V)
    nb = B // bb
    R = bb * D                                  # rows (batch * seq) handled per grid step

    # Pad hidden channels to a full lane width; zero rows/cols keep the math exact.
    MP = ((M + 127) // 128) * 128
    f32 = jnp.float32
    w1p = jnp.zeros((K, MP), f32).at[:, :M].set(w1.astype(f32))
    b1p = jnp.zeros((1, MP), f32).at[:, :M].set(b1.astype(f32))
    w2p = jnp.zeros((K, MP, MP), f32).at[:, :M, :M].set(w2.astype(f32))
    b2p = jnp.zeros((1, MP), f32).at[:, :M].set(b2.astype(f32))
    w3p = jnp.zeros((K, MP, V), f32).at[:, :M, :].set(w3.astype(f32))
    b3p = b3.astype(f32)
    # Fused-tap weights: taps stacked (k-major) along the contraction axis so one
    # (rows, K*MP) x (K*MP, C) matmul replaces K per-tap matmuls.
    w2r = w2p.reshape(K * MP, MP)
    w3r = w3p.reshape(K * MP, V)

    x_flat = x.reshape(B * D, 1).astype(f32)    # sequence flattened onto sublanes

    def kernel(x_ref, w1_ref, b1_ref, w2_ref, b2_ref, w3_ref, b3_ref, out_ref):
        xb = x_ref[...]                                             # (R, 1) float32
        # Position of each row inside its own length-D sequence.  The mask supplies the
        # causal zero padding AND blocks roll wrap / cross-batch leakage.
        d_idx = jax.lax.broadcasted_iota(jnp.int32, (R, 1), 0) % D
        keep = [None] + [(d_idx >= s).astype(f32) for s in range(1, K + 1)]

        def causal_shift(h, s):
            # row r of the result = h[r - s] within its own sequence, zeros for the
            # first s positions of every sequence.
            if s == 0:
                return h
            return pltpu.roll(h, shift=s, axis=0) * keep[s]

        # ---- layer 1: CausalConv1d(1 -> M, kernel K, A=True) + LeakyReLU ----
        # tap k reads the input at position d - (K - k)   (strictly previous, option A)
        w1v = w1_ref[...]                                           # (K, MP)
        h = jnp.zeros((R, MP), f32) + b1_ref[...]
        for k in range(K):
            h = h + causal_shift(xb * w1v[k:k + 1, :], K - k)
        h = jnp.where(h > 0, h, NEG_SLOPE * h)

        # ---- layer 2: CausalConv1d(M -> M, A=False) as ONE (R, K*MP)x(K*MP, MP) matmul
        cat = jnp.concatenate([causal_shift(h, K - 1 - k) for k in range(K)], axis=-1)
        h2 = jnp.dot(cat, w2_ref[...], preferred_element_type=f32) + b2_ref[...]
        h2 = jnp.where(h2 > 0, h2, NEG_SLOPE * h2)

        # ---- layer 3: CausalConv1d(M -> V, A=False) as ONE (R, K*MP)x(K*MP, V) matmul
        cat2 = jnp.concatenate([causal_shift(h2, K - 1 - k) for k in range(K)], axis=-1)
        logits = jnp.dot(cat2, w3_ref[...], preferred_element_type=f32) + b3_ref[...]

        # ---- log-softmax + target gather, clamped in log space ----
        # identical to softmax -> clip(EPS, 1-EPS) -> log -> one-hot gather of the target
        mx = jnp.max(logits, axis=-1, keepdims=True)
        lse = jnp.log(jnp.sum(jnp.exp(logits - mx), axis=-1, keepdims=True))
        cls = jax.lax.broadcasted_iota(jnp.int32, (R, V), 1)
        z_t = jnp.sum(jnp.where(cls == xb.astype(jnp.int32), logits, 0.0),
                      axis=-1, keepdims=True)                       # target logit (R, 1)
        logp = jnp.clip(z_t - mx - lse, LOG_EPS, LOG_ONE_MINUS_EPS)

        out_ref[...] = jnp.sum(logp, axis=0, keepdims=True)         # per-block partial sum

    out = pl.pallas_call(
        kernel,
        out_shape=jax.ShapeDtypeStruct((nb, 1), jnp.float32),
        grid=(nb,),
        in_specs=[
            pl.BlockSpec((R, 1), lambda i: (i, 0)),                 # rows of this batch block
            pl.BlockSpec((K, MP), lambda i: (0, 0)),
            pl.BlockSpec((1, MP), lambda i: (0, 0)),
            pl.BlockSpec((K * MP, MP), lambda i: (0, 0)),
            pl.BlockSpec((1, MP), lambda i: (0, 0)),
            pl.BlockSpec((K * MP, V), lambda i: (0, 0)),
            pl.BlockSpec((1, V), lambda i: (0, 0)),
        ],
        out_specs=pl.BlockSpec((1, 1), lambda i: (i, 0)),
        # Blocks are independent (no cross-step accumulation) -> megacore-shardable.
        compiler_params=pltpu.CompilerParams(dimension_semantics=("parallel",)),
    )(x_flat, w1p, b1p, w2r, b2p, w3r, b3p)

    return -jnp.sum(out) / B


# ---------------- pure-JAX reference (mirrors the PyTorch module) ----------------
def _causal_conv1d_ref(x, w, b, A):
    # x: (B, Cin, L)  NCW like PyTorch;  w: (K, Cin, Cout);  b: (Cout,)
    K = w.shape[0]
    L = x.shape[-1]
    pad = (K - 1) + (1 if A else 0)
    xp = jnp.pad(x, ((0, 0), (0, 0), (pad, 0)))
    out_len = L + (1 if A else 0)
    y = b[None, :, None]
    for k in range(K):
        y = y + jnp.einsum('bci,co->boi', xp[:, :, k:k + out_len], w[k])
    if A:
        y = y[:, :, :-1]
    return y


def arm_forward_ref(x, w1, b1, w2, b2, w3, b3):
    xin = x[:, None, :]                                   # x.unsqueeze(1) -> (B, 1, D)
    h = _causal_conv1d_ref(xin, w1[:, None, :], b1[0], A=True)
    h = jnp.where(h > 0, h, NEG_SLOPE * h)
    h = _causal_conv1d_ref(h, w2, b2[0], A=False)
    h = jnp.where(h > 0, h, NEG_SLOPE * h)
    h = _causal_conv1d_ref(h, w3, b3[0], A=False)          # (B, V, D)
    h = jnp.transpose(h, (0, 2, 1))                        # permute(0, 2, 1)
    p = jax.nn.softmax(h, axis=2)
    p = jnp.clip(p, EPS, 1.0 - EPS)
    onehot = jax.nn.one_hot(x.astype(jnp.int32), p.shape[-1], dtype=jnp.float32)
    log_p = jnp.sum(onehot * jnp.log(p), axis=-1)          # log_categorical sum over classes
    lp = jnp.sum(log_p, axis=-1)                           # .sum(-1) -> (B,)
    return -jnp.mean(lp)                                   # reduction='avg'


# TODO(synk): ARM.sample() (sequential multinomial sampling loop) is not implemented;
# only the forward/log_prob training path is covered.

if __name__ == "__main__":
    B, D, M, V, K = 4, 16, 32, 256, 3   # batch, seq len, hidden channels, num_vals, kernel size

    key = jax.random.PRNGKey(0)
    k0, k1, k2, k3, k4, k5, k6 = jax.random.split(key, 7)

    # Deterministic synthetic parameters. Conv weights are stored as (K, C_in, C_out)
    # (i.e. PyTorch weight (C_out, C_in, K) transposed); layer-1 weight stored as (K, M).
    w1 = jax.random.normal(k0, (K, M), jnp.float32) / math.sqrt(K * 1)
    b1 = 0.1 * jax.random.normal(k1, (1, M), jnp.float32)
    w2 = jax.random.normal(k2, (K, M, M), jnp.float32) / math.sqrt(K * M)
    b2 = 0.1 * jax.random.normal(k3, (1, M), jnp.float32)
    w3 = jax.random.normal(k4, (K, M, V), jnp.float32) / math.sqrt(K * M)
    b3 = 0.1 * jax.random.normal(k5, (1, V), jnp.float32)

    # Integer-valued input (as in the categorical ARM), stored as float32 like PyTorch.
    x = jax.random.randint(k6, (B, D), 0, V).astype(jnp.float32)

    loss = arm_forward_pallas(x, w1, b1, w2, b2, w3, b3)
    loss = jax.block_until_ready(loss)

    loss_ref = arm_forward_ref(x, w1, b1, w2, b2, w3, b3)
    assert jnp.isfinite(loss), "kernel produced non-finite loss"
    assert jnp.allclose(loss, loss_ref, rtol=2e-3, atol=1e-2), (loss, loss_ref)

    print("KERNEL_OK")
</pallas_src>

<mosaic_0001>
module attributes {stable_mosaic.version = 11 : i64} {
  func.func @kernel(%arg0: i32, %arg1: memref<64x1xf32, #tpu.memory_space<vmem>>, %arg2: memref<3x128xf32, #tpu.memory_space<vmem>>, %arg3: memref<1x128xf32, #tpu.memory_space<vmem>>, %arg4: memref<384x128xf32, #tpu.memory_space<vmem>>, %arg5: memref<1x128xf32, #tpu.memory_space<vmem>>, %arg6: memref<384x256xf32, #tpu.memory_space<vmem>>, %arg7: memref<1x256xf32, #tpu.memory_space<vmem>>, %arg8: memref<1x1xf32, #tpu.memory_space<vmem>>) attributes {dimension_semantics = [#tpu.dimension_semantics<parallel>], iteration_bounds = array<i64: 1>, scalar_prefetch = 0 : i64, scratch_operands = 0 : i64, tpu.core_type = #tpu.core_type<tc>, window_params = [{transform_indices = @transform_0, window_bounds = array<i64: 64, 1>}, {pipeline_mode = #tpu.pipeline_mode<synchronous>, transform_indices = @transform_1, window_bounds = array<i64: 3, 128>}, {pipeline_mode = #tpu.pipeline_mode<synchronous>, transform_indices = @transform_2, window_bounds = array<i64: 1, 128>}, {pipeline_mode = #tpu.pipeline_mode<synchronous>, transform_indices = @transform_3, window_bounds = array<i64: 384, 128>}, {pipeline_mode = #tpu.pipeline_mode<synchronous>, transform_indices = @transform_4, window_bounds = array<i64: 1, 128>}, {pipeline_mode = #tpu.pipeline_mode<synchronous>, transform_indices = @transform_5, window_bounds = array<i64: 384, 256>}, {pipeline_mode = #tpu.pipeline_mode<synchronous>, transform_indices = @transform_6, window_bounds = array<i64: 1, 256>}, {transform_indices = @transform_7, window_bounds = array<i64: 1, 1>}]} {
    %c0 = arith.constant 0 : index
    %c0_0 = arith.constant 0 : index
    %0 = vector.load %arg1[%c0, %c0_0] : memref<64x1xf32, #tpu.memory_space<vmem>>, vector<64x1xf32>
    %1 = tpu.iota {dimensions = array<i32: 0>} : vector<64x1xi32>
    %c16_i32 = arith.constant 16 : i32
    %c0_i32 = arith.constant 0 : i32
    %2 = arith.cmpi eq, %c16_i32, %c0_i32 : i32
    %c1_i32 = arith.constant 1 : i32
    %3 = arith.select %2, %c1_i32, %c16_i32 : i32
    %4 = vector.broadcast %3 : i32 to vector<64x1xi32>
    %5 = arith.remsi %1, %4 : vector<64x1xi32>
    %c0_i32_1 = arith.constant 0 : i32
    %6 = vector.broadcast %c0_i32_1 : i32 to vector<64x1xi32>
    %7 = arith.cmpi ne, %5, %6 : vector<64x1xi32>
    %c0_i32_2 = arith.constant 0 : i32
    %8 = vector.broadcast %c0_i32_2 : i32 to vector<64x1xi32>
    %9 = arith.cmpi slt, %5, %8 : vector<64x1xi32>
    %c0_i32_3 = arith.constant 0 : i32
    %10 = arith.cmpi slt, %3, %c0_i32_3 : i32
    %11 = vector.broadcast %10 : i1 to vector<64x1xi1>
    %12 = vector.broadcast %11 : vector<64x1xi1> to vector<64x1xi1>
    %13 = arith.xori %9, %12 : vector<64x1xi1>
    %14 = arith.andi %13, %7 : vector<64x1xi1>
    %15 = vector.broadcast %3 : i32 to vector<64x1xi32>
    %16 = arith.addi %5, %15 : vector<64x1xi32>
    %17 = arith.select %14, %16, %5 : vector<64x1xi1>, vector<64x1xi32>
    %c1_i32_4 = arith.constant 1 : i32
    %18 = vector.broadcast %c1_i32_4 : i32 to vector<64x1xi32>
    %19 = arith.cmpi sge, %17, %18 : vector<64x1xi32>
    %20 = arith.extui %19 : vector<64x1xi1> to vector<64x1xi32>
    %21 = arith.sitofp %20 : vector<64x1xi32> to vector<64x1xf32>
    %c2_i32 = arith.constant 2 : i32
    %22 = vector.broadcast %c2_i32 : i32 to vector<64x1xi32>
    %23 = arith.cmpi sge, %17, %22 : vector<64x1xi32>
    %24 = arith.extui %23 : vector<64x1xi1> to vector<64x1xi32>
    %25 = arith.sitofp %24 : vector<64x1xi32> to vector<64x1xf32>
    %c3_i32 = arith.constant 3 : i32
    %26 = vector.broadcast %c3_i32 : i32 to vector<64x1xi32>
    %27 = arith.cmpi sge, %17, %26 : vector<64x1xi32>
    %28 = arith.extui %27 : vector<64x1xi1> to vector<64x1xi32>
    %29 = arith.sitofp %28 : vector<64x1xi32> to vector<64x1xf32>
    %c0_5 = arith.constant 0 : index
    %c0_6 = arith.constant 0 : index
    %30 = vector.load %arg2[%c0_5, %c0_6] : memref<3x128xf32, #tpu.memory_space<vmem>>, vector<3x128xf32>
    %cst = arith.constant 0.000000e+00 : f32
    %31 = vector.broadcast %cst : f32 to vector<64x128xf32>
    %c0_7 = arith.constant 0 : index
    %c0_8 = arith.constant 0 : index
    %32 = vector.load %arg3[%c0_7, %c0_8] : memref<1x128xf32, #tpu.memory_space<vmem>>, vector<1x128xf32>
    %33 = vector.broadcast %32 : vector<1x128xf32> to vector<64x128xf32>
    %34 = arith.addf %31, %33 : vector<64x128xf32>
    %35 = vector.extract_strided_slice %30 {offsets = [0, 0], sizes = [1, 128], strides = [1, 1]} : vector<3x128xf32> to vector<1x128xf32>
    %36 = vector.broadcast %0 : vector<64x1xf32> to vector<64x128xf32>
    %37 = vector.broadcast %35 : vector<1x128xf32> to vector<64x128xf32>
    %38 = arith.mulf %36, %37 : vector<64x128xf32>
    %c3_i32_9 = arith.constant 3 : i32
    %39 = tpu.dynamic_rotate %38 by %c3_i32_9 dim 0 : vector<64x128xf32>, i32 -> vector<64x128xf32>
    %40 = vector.broadcast %29 : vector<64x1xf32> to vector<64x128xf32>
    %41 = arith.mulf %39, %40 : vector<64x128xf32>
    %42 = arith.addf %34, %41 : vector<64x128xf32>
    %43 = vector.extract_strided_slice %30 {offsets = [1, 0], sizes = [1, 128], strides = [1, 1]} : vector<3x128xf32> to vector<1x128xf32>
    %44 = vector.broadcast %0 : vector<64x1xf32> to vector<64x128xf32>
    %45 = vector.broadcast %43 : vector<1x128xf32> to vector<64x128xf32>
    %46 = arith.mulf %44, %45 : vector<64x128xf32>
    %c2_i32_10 = arith.constant 2 : i32
    %47 = tpu.dynamic_rotate %46 by %c2_i32_10 dim 0 : vector<64x128xf32>, i32 -> vector<64x128xf32>
    %48 = vector.broadcast %25 : vector<64x1xf32> to vector<64x128xf32>
    %49 = arith.mulf %47, %48 : vector<64x128xf32>
    %50 = arith.addf %42, %49 : vector<64x128xf32>
    %51 = vector.extract_strided_slice %30 {offsets = [2, 0], sizes = [1, 128], strides = [1, 1]} : vector<3x128xf32> to vector<1x128xf32>
    %52 = vector.broadcast %0 : vector<64x1xf32> to vector<64x128xf32>
    %53 = vector.broadcast %51 : vector<1x128xf32> to vector<64x128xf32>
    %54 = arith.mulf %52, %53 : vector<64x128xf32>
    %c1_i32_11 = arith.constant 1 : i32
    %55 = tpu.dynamic_rotate %54 by %c1_i32_11 dim 0 : vector<64x128xf32>, i32 -> vector<64x128xf32>
    %56 = vector.broadcast %21 : vector<64x1xf32> to vector<64x128xf32>
    %57 = arith.mulf %55, %56 : vector<64x128xf32>
    %58 = arith.addf %50, %57 : vector<64x128xf32>
    %cst_12 = arith.constant 0.000000e+00 : f32
    %59 = vector.broadcast %cst_12 : f32 to vector<64x128xf32>
    %60 = arith.cmpf ogt, %58, %59 : vector<64x128xf32>
    %cst_13 = arith.constant 0.00999999977 : f32
    %61 = vector.broadcast %cst_13 : f32 to vector<64x128xf32>
    %62 = arith.mulf %61, %58 : vector<64x128xf32>
    %63 = arith.select %60, %58, %62 : vector<64x128xi1>, vector<64x128xf32>
    %c2_i32_14 = arith.constant 2 : i32
    %64 = tpu.dynamic_rotate %63 by %c2_i32_14 dim 0 : vector<64x128xf32>, i32 -> vector<64x128xf32>
    %65 = vector.broadcast %25 : vector<64x1xf32> to vector<64x128xf32>
    %66 = arith.mulf %64, %65 : vector<64x128xf32>
    %c1_i32_15 = arith.constant 1 : i32
    %67 = tpu.dynamic_rotate %63 by %c1_i32_15 dim 0 : vector<64x128xf32>, i32 -> vector<64x128xf32>
    %68 = vector.broadcast %21 : vector<64x1xf32> to vector<64x128xf32>
    %69 = arith.mulf %67, %68 : vector<64x128xf32>
    %70 = tpu.concatenate %66, %69, %63 in 1 : vector<64x128xf32>, vector<64x128xf32>, vector<64x128xf32> -> vector<64x384xf32>
    %c0_16 = arith.constant 0 : index
    %c0_17 = arith.constant 0 : index
    %71 = vector.load %arg4[%c0_16, %c0_17] : memref<384x128xf32, #tpu.memory_space<vmem>>, vector<384x128xf32>
    %cst_18 = arith.constant dense<0.000000e+00> : vector<64x128xf32>
    %72 = tpu.matmul %70, %71, %cst_18 {dimension_numbers = #tpu.dot_dimension_numbers<[1], [0], [0], [1], [0, 0, 1, 1], [], []>} : vector<64x384xf32>, vector<384x128xf32>, vector<64x128xf32> -> vector<64x128xf32>
    %c0_19 = arith.constant 0 : index
    %c0_20 = arith.constant 0 : index
    %73 = vector.load %arg5[%c0_19, %c0_20] : memref<1x128xf32, #tpu.memory_space<vmem>>, vector<1x128xf32>
    %74 = vector.broadcast %73 : vector<1x128xf32> to vector<64x128xf32>
    %75 = arith.addf %72, %74 : vector<64x128xf32>
    %cst_21 = arith.constant 0.000000e+00 : f32
    %76 = vector.broadcast %cst_21 : f32 to vector<64x128xf32>
    %77 = arith.cmpf ogt, %75, %76 : vector<64x128xf32>
    %cst_22 = arith.constant 0.00999999977 : f32
    %78 = vector.broadcast %cst_22 : f32 to vector<64x128xf32>
    %79 = arith.mulf %78, %75 : vector<64x128xf32>
    %80 = arith.select %77, %75, %79 : vector<64x128xi1>, vector<64x128xf32>
    %c2_i32_23 = arith.constant 2 : i32
    %81 = tpu.dynamic_rotate %80 by %c2_i32_23 dim 0 : vector<64x128xf32>, i32 -> vector<64x128xf32>
    %82 = vector.broadcast %25 : vector<64x1xf32> to vector<64x128xf32>
    %83 = arith.mulf %81, %82 : vector<64x128xf32>
    %c1_i32_24 = arith.constant 1 : i32
    %84 = tpu.dynamic_rotate %80 by %c1_i32_24 dim 0 : vector<64x128xf32>, i32 -> vector<64x128xf32>
    %85 = vector.broadcast %21 : vector<64x1xf32> to vector<64x128xf32>
    %86 = arith.mulf %84, %85 : vector<64x128xf32>
    %87 = tpu.concatenate %83, %86, %80 in 1 : vector<64x128xf32>, vector<64x128xf32>, vector<64x128xf32> -> vector<64x384xf32>
    %c0_25 = arith.constant 0 : index
    %c0_26 = arith.constant 0 : index
    %88 = vector.load %arg6[%c0_25, %c0_26] : memref<384x256xf32, #tpu.memory_space<vmem>>, vector<384x256xf32>
    %cst_27 = arith.constant dense<0.000000e+00> : vector<64x256xf32>
    %89 = tpu.matmul %87, %88, %cst_27 {dimension_numbers = #tpu.dot_dimension_numbers<[1], [0], [0], [1], [0, 0, 1, 1], [], []>} : vector<64x384xf32>, vector<384x256xf32>, vector<64x256xf32> -> vector<64x256xf32>
    %c0_28 = arith.constant 0 : index
    %c0_29 = arith.constant 0 : index
    %90 = vector.load %arg7[%c0_28, %c0_29] : memref<1x256xf32, #tpu.memory_space<vmem>>, vector<1x256xf32>
    %91 = vector.broadcast %90 : vector<1x256xf32> to vector<64x256xf32>
    %92 = arith.addf %89, %91 : vector<64x256xf32>
    %cst_30 = arith.constant dense<0xFF800000> : vector<64xf32>
    %93 = vector.multi_reduction <maximumf>, %92, %cst_30 [1] : vector<64x256xf32> to vector<64xf32>
    %94 = vector.shape_cast %93 : vector<64xf32> to vector<64x1xf32>
    %95 = vector.broadcast %94 : vector<64x1xf32> to vector<64x256xf32>
    %96 = arith.subf %92, %95 : vector<64x256xf32>
    %97 = math.exp %96 : vector<64x256xf32>
    %cst_31 = arith.constant dense<0.000000e+00> : vector<64xf32>
    %98 = vector.multi_reduction <add>, %97, %cst_31 [1] : vector<64x256xf32> to vector<64xf32>
    %99 = vector.shape_cast %98 : vector<64xf32> to vector<64x1xf32>
    %100 = math.log %99 : vector<64x1xf32>
    %101 = tpu.iota {dimensions = array<i32: 1>} : vector<64x256xi32>
    %102 = arith.fptosi %0 : vector<64x1xf32> to vector<64x1xi32>
    %103 = vector.broadcast %102 : vector<64x1xi32> to vector<64x256xi32>
    %104 = arith.cmpi eq, %101, %103 : vector<64x256xi32>
    %cst_32 = arith.constant 0.000000e+00 : f32
    %105 = vector.broadcast %cst_32 : f32 to vector<64x256xf32>
    %106 = arith.select %104, %92, %105 : vector<64x256xi1>, vector<64x256xf32>
    %cst_33 = arith.constant dense<0.000000e+00> : vector<64xf32>
    %107 = vector.multi_reduction <add>, %106, %cst_33 [1] : vector<64x256xf32> to vector<64xf32>
    %108 = vector.shape_cast %107 : vector<64xf32> to vector<64x1xf32>
    %109 = arith.subf %108, %94 : vector<64x1xf32>
    %110 = arith.subf %109, %100 : vector<64x1xf32>
    %cst_34 = arith.constant -11.5129251 : f32
    %cst_35 = arith.constant -1.00000498E-5 : f32
    %111 = vector.broadcast %cst_34 : f32 to vector<64x1xf32>
    %112 = arith.maximumf %111, %110 : vector<64x1xf32>
    %113 = vector.broadcast %cst_35 : f32 to vector<64x1xf32>
    %114 = arith.minimumf %113, %112 : vector<64x1xf32>
    %cst_36 = arith.constant dense<0.000000e+00> : vector<1xf32>
    %115 = vector.multi_reduction <add>, %114, %cst_36 [0] : vector<64x1xf32> to vector<1xf32>
    %116 = vector.shape_cast %115 : vector<1xf32> to vector<1x1xf32>
    %c0_37 = arith.constant 0 : index
    %c0_38 = arith.constant 0 : index
    %117 = vector.load %arg8[%c0_37, %c0_38] : memref<1x1xf32, #tpu.memory_space<vmem>>, vector<1x1xf32>
    tpu.vector_store %arg8[%c0_37, %c0_38], %116 {strides = array<i32>} : memref<1x1xf32, #tpu.memory_space<vmem>>, vector<1x1xf32>,
    return
  }
  func.func @transform_0(%arg0: i32) -> (i32, i32) {
    %c0_i32 = arith.constant 0 : i32
    %c0_i32_0 = arith.constant 0 : i32
    return %arg0, %c0_i32 : i32, i32
  }
  func.func @transform_1(%arg0: i32) -> (i32, i32) {
    %c0_i32 = arith.constant 0 : i32
    %c0_i32_0 = arith.constant 0 : i32
    %c0_i32_1 = arith.constant 0 : i32
    return %c0_i32, %c0_i32_0 : i32, i32
  }
  func.func @transform_2(%arg0: i32) -> (i32, i32) {
    %c0_i32 = arith.constant 0 : i32
    %c0_i32_0 = arith.constant 0 : i32
    %c0_i32_1 = arith.constant 0 : i32
    return %c0_i32, %c0_i32_0 : i32, i32
  }
  func.func @transform_3(%arg0: i32) -> (i32, i32) {
    %c0_i32 = arith.constant 0 : i32
    %c0_i32_0 = arith.constant 0 : i32
    %c0_i32_1 = arith.constant 0 : i32
    return %c0_i32, %c0_i32_0 : i32, i32
  }
  func.func @transform_4(%arg0: i32) -> (i32, i32) {
    %c0_i32 = arith.constant 0 : i32
    %c0_i32_0 = arith.constant 0 : i32
    %c0_i32_1 = arith.constant 0 : i32
    return %c0_i32, %c0_i32_0 : i32, i32
  }
  func.func @transform_5(%arg0: i32) -> (i32, i32) {
    %c0_i32 = arith.constant 0 : i32
    %c0_i32_0 = arith.constant 0 : i32
    %c0_i32_1 = arith.constant 0 : i32
    return %c0_i32, %c0_i32_0 : i32, i32
  }
  func.func @transform_6(%arg0: i32) -> (i32, i32) {
    %c0_i32 = arith.constant 0 : i32
    %c0_i32_0 = arith.constant 0 : i32
    %c0_i32_1 = arith.constant 0 : i32
    return %c0_i32, %c0_i32_0 : i32, i32
  }
  func.func @transform_7(%arg0: i32) -> (i32, i32) {
    %c0_i32 = arith.constant 0 : i32
    %c0_i32_0 = arith.constant 0 : i32
    return %arg0, %c0_i32 : i32, i32
  }
}

</mosaic_0001>

<bundles_post_ra>
// kernel: tpu_custom_call.1
= control target key start
LH: loop header
LB: loop body
LE: loop exit
PB: predicated region body
PF: predicated region fallthrough
CT: control target
= control target key end

     0   :  { %12 = vsyncpa [#allocation3], 0  ;;  %s2415_s0 = inlined_call_operand.vmem [shape: f32[64,1], index: 0, kind: input, shape index: {}]   ;;  %s2416_s1 = inlined_call_operand.vmem [shape: f32[3,128], index: 1, kind: input, shape index: {}]   ;;  %s2417_s2 = inlined_call_operand.vmem [shape: f32[1,128], index: 2, kind: input, shape index: {}]   ;;  %s2418_s3 = inlined_call_operand.hbm [shape: f32[384,128], index: 3, kind: input, shape index: {}]   ;;  %s2419_s4 = inlined_call_operand.vmem [shape: f32[1,128], index: 4, kind: input, shape index: {}]   ;;  %s2420_s5 = inlined_call_operand.hbm [shape: f32[384,256], index: 5, kind: input, shape index: {}]   ;;  %s2421_s6 = inlined_call_operand.vmem [shape: f32[1,256], index: 6, kind: input, shape index: {}]   ;;  %s2422_s7 = inlined_call_operand.hbm [shape: f32[1,1], index: 7, kind: output, shape index: {}]  }
   0x1   :  { %13 = vsyncpa [#allocation6], 0 }
   0x2   :  { %14 = vsyncpa [#allocation4], 0  ;;  %s1717_s24 = smov [#allocation2]  }
   0x3   :  { %s26_s25 = sshll.u32 %s1717_s24, 4  ;;  %s27_s25 = int_to_ptr.vmem [resolvable:$true] %s26_s25 }
   0x4   :  { %s1659_s26 = scalar_lea.vmem %s27_s25, 6144  ;;  %p1664_p1 = scmp.lt.s32.totalorder %s27_s25, %s27_s25 }
   0x5   :  { %p1660_p0 = scmp.ne.s32.totalorder %s27_s25, %s1659_s26  ;;  %p1665_p2 = scmp.lt.s32.totalorder %s1659_s26, %s1659_s26 }
   0x7   :  { %p1666_p3 = por %p1665_p2, %p1664_p1 }
   0x9   :  { %p1667_p4 = pnand %p1666_p3, %p1660_p0 }
   0xb   :  { %1670 = shalt.err (!%p1667_p4)
}
   0xc   :  { %s1718_s27 = smov 128   ;;  %s1719_s28 = smov 8  }
   0xd   :  { %32 = dma.hbm_to_vmem [thread:$0]  %s2418_s3, 6144, %s27_s25, [#allocation3], %s1718_s27, %s1718_s27, %s1719_s28  }
   0xe   :  { %s1720_s8 = smov [#allocation5]  }
   0xf   :  { %s40_s9 = sshll.u32 %s1720_s8, 4  ;;  %s41_s9 = int_to_ptr.vmem [resolvable:$true] %s40_s9 }
  0x10   :  { %s1679_s10 = scalar_lea.vmem %s41_s9, 12288  ;;  %p1684_p6 = scmp.lt.s32.totalorder %s41_s9, %s41_s9 }
  0x11   :  { %p1680_p5 = scmp.ne.s32.totalorder %s41_s9, %s1679_s10  ;;  %p1685_p7 = scmp.lt.s32.totalorder %s1679_s10, %s1679_s10 }
  0x13   :  { %p1686_p8 = por %p1685_p7, %p1684_p6 }
  0x15   :  { %p1687_p9 = pnand %p1686_p8, %p1680_p5 }
  0x17   :  { %1690 = shalt.err (!%p1687_p9)
}
  0x18   :  { %s1721_s11 = smov 256   ;;  %s1722_s12 = smov 16  }
  0x19   :  { %46 = dma.hbm_to_vmem [thread:$0]  %s2420_s5, 12288, %s41_s9, [#allocation6], %s1721_s11, %s1721_s11, %s1722_s12  }
  0x1a   :  { %1711 = dma.done.wait [#allocation3], 6144  }
  0x1b   :  { %1712 = vsyncadd [#allocation3], 4294961152 }
  0x1c   :  { %1713 = dma.done.wait [#allocation6], 12288  }
  0x1d   :  { %1714 = vsyncadd [#allocation6], 4294955008  ;;  %v1723_v0 = vmov 0   ;;  %v61_v1 = vld [vmem:[%s2415_s0 + $0x30] sm:$0xff]  ;;  %v55_v2 = vld [vmem:[%s2415_s0] sm:$0xff] }
  0x1e   :  { %1597 = vset.pattern.permute.xlu1 %v1723_v0  ;;  %1596 = vset.pattern.permute.xlu0 %v1723_v0  ;;  %v56_v3 = vld [vmem:[%s2415_s0 + $0x8] sm:$0xff]  ;;  %v62_v4 = vld [vmem:[%s2415_s0 + $0x38] sm:$0xff]  ;;  %v542_v6 = vld [vmem:[#allocation2 + $0x170] sm:$0xff]  ;;  %v1571_v17 = vtrunc.f32 %v55_v2 }
  0x1f   :  { %281 = vperm.xlu1 %1597, %v61_v1   ;;  %251 = vperm.xlu0 %1596, %v55_v2   ;;  %v543_v5 = vld [vmem:[#allocation2 + $0x178] sm:$0xff]  ;;  %v526_v9 = vld [vmem:[#allocation2 + $0xf0] sm:$0xff]  ;;  %v541_v10 = vld [vmem:[#allocation2 + $0x168] sm:$0xff]  ;;  %v1573_v18 = vtrunc.f32 %v56_v3  ;;  %v63_v1 = vlaneseq }
  0x20   :  { %1527 = vmatprep.subr.mxu1 %v543_v5  ;;  %v527_v7 = vld [vmem:[#allocation2 + $0xf8] sm:$0xff]  ;;  %v510_v11 = vld [vmem:[#allocation2 + $0x70] sm:$0xff]  ;;  %v525_v14 = vld [vmem:[#allocation2 + $0xe8] sm:$0xff]  ;;  %v1572_v25 = vcvt.f32.s32 %v1571_v17 }
  0x21   :  { %1528 = vmatpush3.msra.mxu1 %v543_v5  ;;  %1447 = vmatprep.subr.mxu0 %v527_v7  ;;  %v511_v8 = vld [vmem:[#allocation2 + $0x78] sm:$0xff]  ;;  %v57_v13 = vld [vmem:[%s2415_s0 + $0x10] sm:$0xff]  ;;  %v540_v15 = vld [vmem:[#allocation2 + $0x160] sm:$0xff]  ;;  %v1574_v26 = vcvt.f32.s32 %v1573_v18  ;;  %v1796_v2 = vshrl.u32 %v63_v1, 7  ;;  %v1817_v17 = vand.u32 127, %v63_v1 }
  0x22   :  { %v58_v12 = vld [vmem:[%s2415_s0 + $0x18] sm:$0xff]  ;;  %1529 = vmatprep.subr.mxu1 %v542_v6  ;;  %1448 = vmatpush3.msra.mxu0 %v511_v8  ;;  %v509_v16 = vld [vmem:[#allocation2 + $0x68] sm:$0xff]  ;;  %v524_v19 = vld [vmem:[#allocation2 + $0xe0] sm:$0xff]  ;;  %v1575_v27 = vtrunc.f32 %v57_v13 }
  0x23   :  { %256 = vperm.xlu1 %1597, %v56_v3   ;;  %286 = vperm.xlu0 %1596, %v62_v4   ;;  %v60_v20 = vld [vmem:[%s2415_s0 + $0x28] sm:$0xff]  ;;  %v59_v21 = vld [vmem:[%s2415_s0 + $0x20] sm:$0xff]  ;;  %v539_v22 = vld [vmem:[#allocation2 + $0x158] sm:$0xff]  ;;  %v66_v3 = vadd.s32 16, %v1796_v2  ;;  %v70_v4 = vadd.s32 48, %v1796_v2  ;;  %v68_v5 = vadd.s32 32, %v1796_v2 }
  0x24   :  { %1530 = vmatpush3.msra.mxu1 %v542_v6  ;;  %1449 = vmatprep.subr.mxu0 %v526_v9  ;;  %v508_v23 = vld [vmem:[#allocation2 + $0x60] sm:$0xff]  ;;  %v523_v24 = vld [vmem:[#allocation2 + $0xd8] sm:$0xff]  ;;  %v538_v28 = vld [vmem:[#allocation2 + $0x150] sm:$0xff]  ;;  %v1576_v33 = vcvt.f32.s32 %v1575_v27  ;;  %v291_v6 = vsub.s32 0, %v1796_v2  ;;  %v76_v7 = vand.u32 15, %v1796_v2  ;;  %vm309_vm0 = vcmp.lt.s32.totalorder %v1796_v2, 3 }
  0x25   :  { %1531 = vmatprep.subr.mxu1 %v541_v10  ;;  %1450 = vmatpush3.msra.mxu0 %v510_v11  ;;  %v507_v29 = vld [vmem:[#allocation2 + $0x58] sm:$0xff]  ;;  %v522_v30 = vld [vmem:[#allocation2 + $0xd0] sm:$0xff]  ;;  %v537_v31 = vld [vmem:[#allocation2 + $0x148] sm:$0xff]  ;;  %v90_v9 = vand.u32 15, %v66_v3  ;;  %v104_v11 = vand.u32 15, %v68_v5  ;;  %vm354_vm10 = vcmp.lt.s32.totalorder %v1796_v2, 2 }
  0x26   :  { %1532 = vmatpush3.msra.mxu1 %v541_v10  ;;  %1451 = vmatprep.subr.mxu0 %v525_v14  ;;  %v506_v32 = vld [vmem:[#allocation2 + $0x50] sm:$0xff]  ;;  %v521_v34 = vld [vmem:[#allocation2 + $0xc8] sm:$0xff]  ;;  %v536_v35 = vld [vmem:[#allocation2 + $0x140] sm:$0xff]  ;;  %v1806_v10 = vand.u32 15, %v70_v4  ;;  %vm192_vm1 = vcmp.ge.s32.totalorder %v76_v7, 2  ;;  %vm216_vm2 = vcmp.ge.s32.totalorder %v76_v7, 3 }
  0x27   :  { %266 = vperm.xlu1 %1597, %v58_v12   ;;  %261 = vperm.xlu0 %1596, %v57_v13   ;;  %v505_v36 = vld [vmem:[#allocation2 + $0x48] sm:$0xff]  ;;  %v535_v37 = vld [vmem:[#allocation2 + $0x138] sm:$0xff]  ;;  %v520_v38 = vld [vmem:[#allocation2 + $0xc0] sm:$0xff]  ;;  %v336_v12 = vsub.s32 1, %v1796_v2  ;;  %v381_v13 = vsub.s32 2, %v1796_v2  ;;  %vm194_vm3 = vcmp.ge.s32.totalorder %v90_v9, 2 }
  0x28   :  { %1533 = vmatprep.subr.mxu1 %v540_v15  ;;  %1452 = vmatpush3.msra.mxu0 %v509_v16  ;;  %v504_v39 = vld [vmem:[#allocation2 + $0x40] sm:$0xff]  ;;  %v534_v40 = vld [vmem:[#allocation2 + $0x130] sm:$0xff]  ;;  %v519_v41 = vld [vmem:[#allocation2 + $0xb8] sm:$0xff]  ;;  %vm218_vm4 = vcmp.ge.s32.totalorder %v90_v9, 3  ;;  %vm168_vm5 = vcmp.ge.s32.totalorder %v76_v7, 1  ;;  %vm198_vm6 = vcmp.ge.s32.totalorder %v1806_v10, 2 }
  0x29   :  { %1534 = vmatpush3.msra.mxu1 %v540_v15  ;;  %1453 = vmatprep.subr.mxu0 %v524_v19  ;;  %v503_v42 = vld [vmem:[#allocation2 + $0x38] sm:$0xff]  ;;  %v533_v43 = vld [vmem:[#allocation2 + $0x128] sm:$0xff]  ;;  %v518_v44 = vld [vmem:[#allocation2 + $0xb0] sm:$0xff]  ;;  %vm222_vm7 = vcmp.ge.s32.totalorder %v1806_v10, 3  ;;  %vm196_vm8 = vcmp.ge.s32.totalorder %v104_v11, 2  ;;  %vm220_vm9 = vcmp.ge.s32.totalorder %v104_v11, 3 }
  0x2a   :  { %1535 = vmatprep.subr.mxu1 %v539_v22  ;;  %1454 = vmatpush3.msra.mxu0 %v508_v23  ;;  %v502_v45 = vld [vmem:[#allocation2 + $0x30] sm:$0xff]  ;;  %v532_v46 = vld [vmem:[#allocation2 + $0x120] sm:$0xff]  ;;  %v517_v47 = vld [vmem:[#allocation2 + $0xa8] sm:$0xff]  ;;  %vm170_vm11 = vcmp.ge.s32.totalorder %v90_v9, 1  ;;  %vm399_vm12 = vcmp.lt.s32.totalorder %v1796_v2, 1  ;;  %vm172_vm13 = vcmp.ge.s32.totalorder %v104_v11, 1 }
  0x2b   :  { %276 = vperm.xlu1 %1597, %v60_v20   ;;  %271 = vperm.xlu0 %1596, %v59_v21   ;;  %v501_v48 = vld [vmem:[#allocation2 + $0x28] sm:$0xff]  ;;  %v531_v49 = vld [vmem:[#allocation2 + $0x118] sm:$0xff]  ;;  %v516_v50 = vld [vmem:[#allocation2 + $0xa0] sm:$0xff]  ;;  %v1724_v21 = vmov 0.0   ;;  %vm174_vm14 = vcmp.ge.s32.totalorder %v1806_v10, 1 }
  0x2c   :  { %1536 = vmatpush3.msra.mxu1 %v539_v22  ;;  %1455 = vmatprep.subr.mxu0 %v523_v24  ;;  %v500_v51 = vld [vmem:[#allocation2 + $0x20] sm:$0xff]  ;;  %v530_v52 = vld [vmem:[#allocation2 + $0x110] sm:$0xff]  ;;  %v515_v53 = vld [vmem:[#allocation2 + $0x98] sm:$0xff]  ;;  %v1831_v22 = vsel %vm192_vm1, 1.0, %v1724_v21  ;;  %v1441_v23 = vsel %vm216_vm2, 1.0, %v1724_v21  ;;  %v1837_v24 = vsel %vm194_vm3, 1.0, %v1724_v21 }
  0x2d   :  { %1537 = vmatprep.subr.mxu1 %v538_v28  ;;  %1456 = vmatpush3.msra.mxu0 %v507_v29  ;;  %v499_v54 = vld [vmem:[#allocation2 + $0x18] sm:$0xff]  ;;  %v529_v55 = vld [vmem:[#allocation2 + $0x108] sm:$0xff]  ;;  %v514_v56 = vld [vmem:[#allocation2 + $0x90] sm:$0xff]  ;;  %v1847_v27 = vsel %vm222_vm7, 1.0, %v1724_v21  ;;  %v1854_v29 = vsel %vm168_vm5, 1.0, %v1724_v21 }
  0x2e   :  { %1538 = vmatpush3.msra.mxu1 %v538_v28  ;;  %1457 = vmatprep.subr.mxu0 %v522_v30  ;;  %v498_v57 = vld [vmem:[#allocation2 + $0x10] sm:$0xff]  ;;  %v528_v58 = vld [vmem:[#allocation2 + $0x100] sm:$0xff]  ;;  %v513_v59 = vld [vmem:[#allocation2 + $0x88] sm:$0xff]  ;;  %v1850_v28 = vsel %vm196_vm8, 1.0, %v1724_v21 }
  0x2f   :  { %1294 = vperm.xlu0 %1596, %v1574_v26   ;;  %1291 = vperm.xlu1 %1597, %v1572_v25   ;;  %v497_v60 = vld [vmem:[#allocation2 + $0x8] sm:$0xff]  ;;  %v512_v61 = vld [vmem:[#allocation2 + $0x80] sm:$0xff]  ;;  %v928_v63 = vld [vmem:[#allocation5 + $0x2f8] sm:$0xff]  ;;  %v1841_v25 = vsel %vm218_vm4, 1.0, %v1724_v21  ;;  %v1844_v26 = vsel %vm198_vm6, 1.0, %v1724_v21 }
  0x30   :  { %1539 = vmatprep.subr.mxu1 %v537_v31  ;;  %1458 = vmatpush3.msra.mxu0 %v506_v32  ;;  %v496_v62 = vld [vmem:[#allocation2] sm:$0xff]  ;;  %v864_v0 = vld [vmem:[#allocation5 + $0xf8] sm:$0xff] }
  0x31   :  { %1540 = vmatpush3.msra.mxu1 %v537_v31  ;;  %1459 = vmatprep.subr.mxu0 %v521_v34  ;;  %v240_v8 = vld [vmem:[%s2416_s1] sm:$0x7]  ;;  %v1861_v34 = vadd.s32 128, %v1817_v17 }
  0x32   :  { %1541 = vmatprep.subr.mxu1 %v536_v35  ;;  %1460 = vmatpush3.msra.mxu0 %v505_v36  ;;  %v1812_v14 = vrot.slane %v240_v8, %v291_v6  ;;  %v1821_v18 = vrot.slane %v240_v8, %v336_v12  ;;  %v1823_v19 = vrot.slane %v240_v8, %v381_v13 }
  0x33   :  { %1297 = vperm.xlu1 %1597, %v1576_v33   ;;  %1542 = vmatpush3.msra.mxu1 %v536_v35  ;;  %v1858_v33 = vsel %vm220_vm9, 1.0, %v1724_v21 }
  0x34   :  { %1543 = vmatprep.subr.mxu1 %v535_v37  ;;  %1461 = vmatprep.subr.mxu0 %v520_v38 }
  0x35   :  { %1544 = vmatpush3.msra.mxu1 %v535_v37  ;;  %1462 = vmatpush3.msra.mxu0 %v504_v39 }
  0x36   :  { %1545 = vmatprep.subr.mxu1 %v534_v40  ;;  %1463 = vmatprep.subr.mxu0 %v519_v41 }
  0x37   :  { %1546 = vmatpush3.msra.mxu1 %v534_v40  ;;  %1464 = vmatpush3.msra.mxu0 %v503_v42 }
  0x38   :  { %1547 = vmatprep.subr.mxu1 %v533_v43  ;;  %1465 = vmatprep.subr.mxu0 %v518_v44 }
  0x39   :  { %1548 = vmatpush3.msra.mxu1 %v533_v43  ;;  %1466 = vmatpush3.msra.mxu0 %v502_v45 }
  0x3a   :  { %1549 = vmatprep.subr.mxu1 %v532_v46  ;;  %1467 = vmatprep.subr.mxu0 %v517_v47 }
  0x3b   :  { %1550 = vmatpush3.msra.mxu1 %v532_v46  ;;  %1468 = vmatpush3.msra.mxu0 %v501_v48 }
  0x3c   :  { %1551 = vmatprep.subr.mxu1 %v531_v49  ;;  %1469 = vmatprep.subr.mxu0 %v516_v50  ;;  %v1891_v50 = vsel %vm170_vm11, 1.0, %v1724_v21 }
  0x3d   :  { %1552 = vmatpush3.msra.mxu1 %v531_v49  ;;  %1470 = vmatpush3.msra.mxu0 %v500_v51 }
  0x3e   :  { %1553 = vmatprep.subr.mxu1 %v530_v52  ;;  %1471 = vmatprep.subr.mxu0 %v515_v53 }
  0x3f   :  { %1554 = vmatpush3.msra.mxu1 %v530_v52  ;;  %1472 = vmatpush3.msra.mxu0 %v499_v54  ;;  %v1896_v52 = vld [vmem:[%s2417_s2] ss:$0 sm:$0xff] }
  0x40   :  { %1555 = vmatprep.subr.mxu1 %v529_v55  ;;  %1473 = vmatprep.subr.mxu0 %v514_v56 }
  0x41   :  { %1556 = vmatpush3.msra.mxu1 %v529_v55  ;;  %1474 = vmatpush3.msra.mxu0 %v498_v57  ;;  %v1904_v55 = vsel %vm172_vm13, 1.0, %v1724_v21 }
  0x42   :  { %1557 = vmatprep.subr.mxu1 %v528_v58  ;;  %1475 = vmatprep.subr.mxu0 %v513_v59  ;;  %v1909_v59 = vsel %vm174_vm14, 1.0, %v1724_v21 }
  0x43   :  { %1558 = vmatpush3.msra.mxu1 %v528_v58  ;;  %1476 = vmatpush3.msra.mxu0 %v497_v60 }
  0x44   :  { %1477 = vmatprep.subr.mxu0 %v512_v61  ;;  %1054 = vmatprep.subr.mxu1 %v928_v63 }
  0x45   :  { %1478 = vmatpush3.msra.mxu0 %v496_v62 }
  0x46   :  { %941 = vmatprep.subr.mxu0 %v864_v0 }
  0x9a   :  { %v282_v15 = vpop.permute.xlu1 %281  ;;  %v252_v16 = vpop.permute.xlu0 %251 }
  0x9b   :  { %v1826_v20 = vmul.f32 %v1812_v14, %v282_v15  ;;  %v293_v30 = vmul.f32 %v1812_v14, %v252_v16  ;;  %v1873_v39 = vmul.f32 %v1821_v18, %v282_v15  ;;  %v1876_v40 = vmul.f32 %v1823_v19, %v282_v15 }
  0x9c   :  { %v338_v41 = vmul.f32 %v1821_v18, %v252_v16  ;;  %v1883_v45 = vmul.f32 %v1823_v19, %v252_v16 }
  0x9d   :  { %v307_v35 = vrot.slane %v1826_v20, 5  ;;  %v301_v51 = vrot.slane %v293_v30, 5  ;;  %v352_v56 = vrot.slane %v1873_v39, 6  ;;  %v397_v57 = vrot.slane %v1876_v40, 7 }
  0x9e   :  { %v257_v31 = vpop.permute.xlu1 %256  ;;  %v287_v32 = vpop.permute.xlu0 %286  ;;  %v346_v58 = vrot.slane %v338_v41, 6  ;;  %v391_v0 = vrot.slane %v1883_v45, 7 }
  0x9f   :  { %v1865_v36 = vmul.f32 %v1812_v14, %v257_v31  ;;  %v1868_v37 = vmul.f32 %v1821_v18, %v257_v31  ;;  %v300_v38 = vmul.f32 %v1812_v14, %v287_v32  ;;  %v345_v44 = vmul.f32 %v1821_v18, %v287_v32 }
  0xa0   :  { %v1886_v46 = vmul.f32 %v1823_v19, %v257_v31  ;;  %v390_v47 = vmul.f32 %v1823_v19, %v287_v32 }
  0xa1   :  { %v302_v42 = vrot.slane %v1865_v36, 5  ;;  %v308_v43 = vrot.slane %v300_v38, 5  ;;  %v347_v53 = vrot.slane %v1868_v37, 6  ;;  %v353_v62 = vrot.slane %v345_v44, 6 }
  0xa2   :  { %v267_v48 = vpop.permute.xlu1 %266  ;;  %v262_v49 = vpop.permute.xlu0 %261  ;;  %v392_v1 = vrot.slane %v1886_v46, 7  ;;  %v398_v4 = vrot.slane %v390_v47, 7 }
  0xa3   :  { %v310_v54 = vsel %vm309_vm0, %v307_v35, %v308_v43  ;;  %v316_v60 = vsel %vm309_vm0, %v301_v51, %v302_v42  ;;  %v317_v61 = vsel %vm309_vm0, %v308_v43, %v301_v51  ;;  %v296_v63 = vmul.f32 %v1812_v14, %v267_v48 }
  0xa4   :  { %v333_v3 = vadd.f32 %v1896_v52, %v310_v54  ;;  %v361_v7 = vsel %vm354_vm10, %v346_v58, %v347_v53  ;;  %v341_v8 = vmul.f32 %v1821_v18, %v267_v48  ;;  %v295_v9 = vmul.f32 %v1812_v14, %v262_v49 }
  0xa5   :  { %v340_v10 = vmul.f32 %v1821_v18, %v262_v49  ;;  %v327_v13 = vadd.f32 %v1896_v52, %v316_v60  ;;  %v318_v15 = vmul.f32 %v1441_v23, %v317_v61  ;;  %v1926_v16 = vmul.f32 %v1823_v19, %v262_v49 }
  0xa6   :  { %v277_v5 = vpop.permute.xlu1 %276  ;;  %v272_v11 = vpop.permute.xlu0 %271  ;;  %v355_v31 = vsel %vm354_vm10, %v352_v56, %v353_v62  ;;  %v304_v32 = vrot.slane %v296_v63, 5  ;;  %v303_v36 = vrot.slane %v295_v9, 5  ;;  %v362_v38 = vsel %vm354_vm10, %v353_v62, %v346_v58 }
  0xa7   :  { %v298_v30 = vmul.f32 %v1812_v14, %v277_v5  ;;  %v348_v37 = vrot.slane %v340_v10, 6  ;;  %v378_v41 = vadd.f32 %v355_v31, %v333_v3  ;;  %v297_v43 = vmul.f32 %v1812_v14, %v272_v11 }
  0xa8   :  { %v1937_v23 = vmul.f32 %v1821_v18, %v272_v11  ;;  %v400_v44 = vsel %vm399_vm12, %v397_v57, %v398_v4  ;;  %v349_v45 = vrot.slane %v341_v8, 6  ;;  %v386_v46 = vmul.f32 %v1823_v19, %v267_v48 }
  0xa9   :  { %v306_v47 = vrot.slane %v298_v30, 5  ;;  %v407_v49 = vsel %vm399_vm12, %v398_v4, %v391_v0  ;;  %v393_v51 = vrot.slane %v1926_v16, 7  ;;  %v1948_v54 = vmul.f32 %v1821_v18, %v277_v5 }
  0xaa   :  { %v1951_v14 = vmul.f32 %v1823_v19, %v277_v5  ;;  %v314_v58 = vsel %vm309_vm0, %v303_v36, %v304_v32  ;;  %v315_v60 = vsel %vm309_vm0, %v302_v42, %v303_v36  ;;  %v360_v48 = vsel %vm354_vm10, %v347_v53, %v348_v37  ;;  %v1964_v4 = vpop.permute.xlu1 %1291 }
  0xab   :  { %v305_v61 = vrot.slane %v297_v43, 5  ;;  %v363_v62 = vmul.f32 %v1831_v22, %v362_v38  ;;  %v423_v63 = vadd.f32 %v400_v44, %v378_v41  ;;  %v350_v3 = vrot.slane %v1937_v23, 6 }
  0xac   :  { %v1962_v18 = vmul.f32 %v1823_v19, %v272_v11  ;;  %v394_v5 = vrot.slane %v386_v46, 7  ;;  %v359_v8 = vsel %vm354_vm10, %v348_v37, %v349_v45  ;;  %v311_v42 = vsel %vm309_vm0, %v306_v47, %v307_v35 }
  0xad   :  { %v313_v53 = vsel %vm309_vm0, %v304_v32, %v305_v61  ;;  %v320_v9 = vmul.f32 %v1841_v25, %v315_v60  ;;  %v329_v10 = vadd.f32 %v1896_v52, %v314_v58  ;;  %v365_v19 = vmul.f32 %v1837_v24, %v360_v48 }
  0xae   :  { %v405_v11 = vsel %vm399_vm12, %v392_v1, %v393_v51  ;;  %v351_v16 = vrot.slane %v1948_v54, 6  ;;  %v396_v30 = vrot.slane %v1951_v14, 7  ;;  %v358_v20 = vsel %vm354_vm10, %v349_v45, %v350_v3 }
  0xaf   :  { %vm1314_vm15 = vcmp.eq.s32.totalorder %v1817_v17, %v1964_v4  ;;  %v1986_v35 = vmul.f32 %v1847_v27, %v311_v42  ;;  %v322_v25 = vmul.f32 %v1858_v33, %v313_v53  ;;  %v395_v31 = vrot.slane %v1962_v18, 7 }
  0xb0   :  { %vm1315_vm1 = vcmp.eq.s32.totalorder %v1861_v34, %v1964_v4  ;;  %v312_v32 = vsel %vm309_vm0, %v305_v61, %v306_v47  ;;  %v367_v36 = vmul.f32 %v1850_v28, %v358_v20  ;;  %v326_v37 = vadd.f32 %v1896_v52, %v318_v15 }
  0xb1   :  { %v372_v38 = vadd.f32 %v361_v7, %v327_v13  ;;  %v408_v41 = vmul.f32 %v1854_v29, %v407_v49  ;;  %v406_v27 = vsel %vm399_vm12, %v391_v0, %v392_v1  ;;  %v328_v33 = vadd.f32 %v1896_v52, %v320_v9 }
  0xb2   :  { %vm431_vm2 = vcmp.gt.f32.partialorder %v423_v63, 0.0  ;;  %v371_v43 = vadd.f32 %v363_v62, %v326_v37  ;;  %v439_v44 = vmul.f32 0.01, %v423_v63  ;;  %v374_v45 = vadd.f32 %v359_v8, %v329_v10  ;;  %v927_v10 = vld [vmem:[#allocation5 + $0x2f0] sm:$0xff] }
  0xb3   :  { %v417_v23 = vadd.f32 %v406_v27, %v372_v38  ;;  %v403_v46 = vsel %vm399_vm12, %v394_v5, %v395_v31  ;;  %v373_v47 = vadd.f32 %v365_v19, %v328_v33  ;;  %v410_v7 = vmul.f32 %v1891_v50, %v405_v11  ;;  %v925_v38 = vld [vmem:[#allocation5 + $0x2e0] sm:$0xff] }
  0xb4   :  { %v330_v13 = vadd.f32 %v1896_v52, %v322_v25  ;;  %v416_v15 = vadd.f32 %v408_v41, %v371_v43  ;;  %v2006_v0 = vsel %vm431_vm2, %v423_v63, %v439_v44  ;;  %v404_v1 = vsel %vm399_vm12, %v393_v51, %v394_v5 }
  0xb5   :  { %v433_v49 = vmul.f32 0.01, %v417_v23  ;;  %v331_v54 = vadd.f32 %v1896_v52, %v312_v32  ;;  %vm425_vm0 = vcmp.gt.f32.partialorder %v417_v23, 0.0  ;;  %v418_v58 = vadd.f32 %v410_v7, %v373_v47  ;;  %v926_v32 = vld [vmem:[#allocation5 + $0x2e8] sm:$0xff] }
  0xb6   :  { %v419_v60 = vadd.f32 %v404_v1, %v374_v45  ;;  %vm424_vm3 = vcmp.gt.f32.partialorder %v416_v15, 0.0  ;;  %v432_v48 = vmul.f32 0.01, %v416_v15  ;;  %v375_v61 = vadd.f32 %v367_v36, %v330_v13  ;;  %v863_v45 = vld [vmem:[#allocation5 + $0xf0] sm:$0xff]  ;;  %v862_v7 = vld [vmem:[#allocation5 + $0xe8] sm:$0xff] }
  0xb7   :  { %v412_v62 = vmul.f32 %v1904_v55, %v403_v46  ;;  %v357_v8 = vsel %vm354_vm10, %v350_v3, %v351_v16  ;;  %vm426_vm4 = vcmp.gt.f32.partialorder %v418_v58, 0.0  ;;  %v434_v42 = vmul.f32 0.01, %v418_v58 }
  0xb8   :  { %v479_v63 = vrot.slane %v2006_v0, 7  ;;  %v440_v53 = vsel %vm424_vm3, %v416_v15, %v432_v48  ;;  %v441_v9 = vsel %vm425_vm0, %v417_v23, %v433_v49  ;;  %v455_v51 = vrot.slane %v2006_v0, 6  ;;  %v861_v15 = vld [vmem:[#allocation5 + $0xe0] sm:$0xff] }
  0xb9   :  { %v420_v5 = vadd.f32 %v412_v62, %v375_v61  ;;  %v448_v19 = vrot.slane %v440_v53, 6  ;;  %v472_v11 = vrot.slane %v440_v53, 7  ;;  %1559 = vmatprep.mubr.f32.mxu1 %v440_v53  ;;  %v2016_v20 = vsel %vm426_vm4, %v418_v58, %v434_v42  ;;  %v923_v58 = vld [vmem:[#allocation5 + $0x2d0] sm:$0xff]  ;;  %v860_v62 = vld [vmem:[#allocation5 + $0xd8] sm:$0xff] }
  0xba   :  { %v435_v25 = vmul.f32 0.01, %v419_v60  ;;  %v356_v3 = vsel %vm354_vm10, %v351_v16, %v352_v56  ;;  %v401_v36 = vsel %vm399_vm12, %v396_v30, %v397_v57  ;;  %1560 = vmatmul.mubr.f32.vlgmr.msra.gmra.mxu1 %v441_v9  ;;  %vm427_vm5 = vcmp.gt.f32.partialorder %v419_v60, 0.0 }
  0xbb   :  { %v376_v37 = vadd.f32 %v357_v8, %v331_v54  ;;  %v474_v41 = vrot.slane %v2016_v20, 7  ;;  %1562 = vmatprep.mubr.f32.mxu1 %v2016_v20  ;;  %v487_v39 = vsel %vm399_vm12, %v479_v63, %v472_v11  ;;  %v463_v40 = vsel %vm354_vm10, %v455_v51, %v448_v19  ;;  %1055 = vmatpush1.msra.mxu1 %v927_v10  ;;  %v922_v8 = vld [vmem:[#allocation5 + $0x2c8] sm:$0xff] }
  0xbc   :  { %vm428_vm6 = vcmp.gt.f32.partialorder %v420_v5, 0.0  ;;  %v473_v56 = vrot.slane %v441_v9, 7  ;;  %v488_v57 = vmul.f32 %v1854_v29, %v487_v39  ;;  %v464_v16 = vmul.f32 %v1831_v22, %v463_v40  ;;  %1056 = vmatprep.subr.mxu1 %v926_v32  ;;  %v858_v32 = vld [vmem:[#allocation5 + $0xc8] sm:$0xff]  ;;  %v919_v40 = vld [vmem:[#allocation5 + $0x2b0] sm:$0xff] }
  0xbd   :  { %v436_v27 = vmul.f32 0.01, %v420_v5  ;;  %v369_v33 = vmul.f32 %v1844_v26, %v356_v3  ;;  %v2041_v43 = vsel %vm427_vm5, %v419_v60, %v435_v25  ;;  %v402_v23 = vsel %vm399_vm12, %v395_v31, %v396_v30  ;;  %1057 = vmatpush1.msra.mxu1 %v925_v38  ;;  %v924_v31 = vld [vmem:[#allocation5 + $0x2d8] sm:$0xff]  ;;  %v921_v25 = vld [vmem:[#allocation5 + $0x2c0] sm:$0xff] }
  0xbe   :  { %v332_v44 = vadd.f32 %v1896_v52, %v1986_v35  ;;  %v450_v46 = vrot.slane %v2016_v20, 6  ;;  %615 = vmatprep.mubr.f32.mxu0 %v488_v57  ;;  %1563 = vmatmul.mubr.f32.gmra.mxu1 %v2041_v43  ;;  %v486_v47 = vsel %vm399_vm12, %v472_v11, %v473_v56  ;;  %v421_v18 = vadd.f32 %v402_v23, %v376_v37  ;;  %v920_v37 = vld [vmem:[#allocation5 + $0x2b8] sm:$0xff]  ;;  %v857_v38 = vld [vmem:[#allocation5 + $0xc0] sm:$0xff]  ;;  %v854_v23 = vld [vmem:[#allocation5 + $0xa8] sm:$0xff] }
  0xbf   :  { %v2056_v14 = vsel %vm428_vm6, %v420_v5, %v436_v27  ;;  %v449_v13 = vrot.slane %v441_v9, 6  ;;  %616 = vmatmul.mubr.f32.vlgmr.msra.gmra.mxu0 %v464_v16  ;;  %v414_v30 = vmul.f32 %v1909_v59, %v401_v36  ;;  %v485_v35 = vsel %vm399_vm12, %v473_v56, %v474_v41  ;;  %1058 = vmatprep.subr.mxu1 %v924_v31  ;;  %v859_v9 = vld [vmem:[#allocation5 + $0xd0] sm:$0xff]  ;;  %v856_v56 = vld [vmem:[#allocation5 + $0xb8] sm:$0xff]  ;;  %v918_v16 = vld [vmem:[#allocation5 + $0x2a8] sm:$0xff] }
  0xc0   :  { %1565 = vmatprep.mubr.f32.mxu1 %v2056_v14  ;;  %v377_v52 = vadd.f32 %v369_v33, %v332_v44  ;;  %620 = vmatprep.mubr.f32.mxu0 %v486_v47  ;;  %vm429_vm7 = vcmp.gt.f32.partialorder %v421_v18, 0.0  ;;  %v437_v49 = vmul.f32 0.01, %v421_v18  ;;  %v490_v48 = vmul.f32 %v1891_v50, %v485_v35  ;;  %v855_v27 = vld [vmem:[#allocation5 + $0xb0] sm:$0xff]  ;;  %v916_v44 = vld [vmem:[#allocation5 + $0x298] sm:$0xff]  ;;  %v853_v47 = vld [vmem:[#allocation5 + $0xa0] sm:$0xff] }
  0xc1   :  { %942 = vmatpush1.msra.mxu0 %v863_v45  ;;  %v462_v1 = vsel %vm354_vm10, %v448_v19, %v449_v13  ;;  %v461_v61 = vsel %vm354_vm10, %v449_v13, %v450_v46  ;;  %v476_v42 = vrot.slane %v2056_v14, 7  ;;  %1059 = vmatpush1.msra.mxu1 %v923_v58  ;;  %v475_v5 = vrot.slane %v2041_v43, 7 }
  0xc2   :  { %v422_v54 = vadd.f32 %v414_v30, %v377_v52  ;;  %943 = vmatprep.subr.mxu0 %v862_v7  ;;  %v2066_v60 = vsel %vm429_vm7, %v421_v18, %v437_v49  ;;  %v466_v19 = vmul.f32 %v1837_v24, %v461_v61  ;;  %1060 = vmatprep.subr.mxu1 %v922_v8  ;;  %v452_v11 = vrot.slane %v2056_v14, 6  ;;  %v915_v18 = vld [vmem:[#allocation5 + $0x290] sm:$0xff]  ;;  %v852_v7 = vld [vmem:[#allocation5 + $0x98] sm:$0xff]  ;;  %v914_v30 = vld [vmem:[#allocation5 + $0x288] sm:$0xff] }
  0xc3   :  { %944 = vmatpush1.msra.mxu0 %v861_v15  ;;  %1566 = vmatmul.mubr.f32.gmra.mxu1 %v2066_v60  ;;  %v484_v3 = vsel %vm399_vm12, %v474_v41, %v475_v5  ;;  %v483_v36 = vsel %vm399_vm12, %v475_v5, %v476_v42  ;;  %v451_v39 = vrot.slane %v2041_v43, 6  ;;  %v917_v43 = vld [vmem:[#allocation5 + $0x2a0] sm:$0xff]  ;;  %v477_v45 = vrot.slane %v2066_v60, 7  ;;  %v850_v61 = vld [vmem:[#allocation5 + $0x88] sm:$0xff]  ;;  %v908_v5 = vld [vmem:[#allocation5 + $0x258] sm:$0xff] }
  0xc4   :  { %621 = vmatmul.mubr.f32.gmra.mxu0 %v462_v1  ;;  %vm430_vm8 = vcmp.gt.f32.partialorder %v422_v54, 0.0  ;;  %v438_v53 = vmul.f32 0.01, %v422_v54  ;;  %945 = vmatprep.subr.mxu0 %v860_v62  ;;  %v492_v20 = vmul.f32 %v1904_v55, %v483_v36  ;;  %v453_v35 = vrot.slane %v2066_v60, 6  ;;  %v851_v60 = vld [vmem:[#allocation5 + $0x90] sm:$0xff]  ;;  %v912_v62 = vld [vmem:[#allocation5 + $0x278] sm:$0xff] }
  0xc5   :  { %625 = vmatprep.mubr.f32.mxu0 %v490_v48  ;;  %946 = vmatpush1.msra.mxu0 %v859_v9  ;;  %v460_v57 = vsel %vm354_vm10, %v450_v46, %v451_v39  ;;  %v459_v41 = vsel %vm354_vm10, %v451_v39, %v452_v11  ;;  %v482_v13 = vsel %vm399_vm12, %v476_v42, %v477_v45  ;;  %v913_v48 = vld [vmem:[#allocation5 + $0x280] sm:$0xff]  ;;  %v911_v42 = vld [vmem:[#allocation5 + $0x270] sm:$0xff]  ;;  %v842_v36 = vld [vmem:[#allocation5 + $0x48] sm:$0xff] }
  0xc6   :  { %v2074_v10 = vsel %vm430_vm8, %v422_v54, %v438_v53  ;;  %1061 = vmatpush1.msra.mxu1 %v921_v25  ;;  %947 = vmatprep.subr.mxu0 %v858_v32  ;;  %v468_v46 = vmul.f32 %v1850_v28, %v459_v41  ;;  %v458_v31 = vsel %vm354_vm10, %v452_v11, %v453_v35  ;;  %v849_v8 = vld [vmem:[#allocation5 + $0x80] sm:$0xff]  ;;  %v848_v53 = vld [vmem:[#allocation5 + $0x78] sm:$0xff]  ;;  %v906_v25 = vld [vmem:[#allocation5 + $0x248] sm:$0xff] }
  0xc7   :  { %1568 = vmatprep.mubr.f32.mxu1 %v2074_v10  ;;  %1062 = vmatprep.subr.mxu1 %v920_v37  ;;  %v478_v33 = vrot.slane %v2074_v10, 7  ;;  %v454_v14 = vrot.slane %v2074_v10, 6  ;;  %v909_v9 = vld [vmem:[#allocation5 + $0x260] sm:$0xff]  ;;  %v844_v11 = vld [vmem:[#allocation5 + $0x58] sm:$0xff]  ;;  %v843_v32 = vld [vmem:[#allocation5 + $0x50] sm:$0xff] }
  0xc8   :  { %1569 = vmatmul.mubr.f32.gmra.mxu1 %v2006_v0  ;;  %626 = vmatmul.mubr.f32.gmra.mxu0 %v466_v19  ;;  %v847_v0 = vld [vmem:[#allocation5 + $0x70] sm:$0xff]  ;;  %v845_v10 = vld [vmem:[#allocation5 + $0x60] sm:$0xff]  ;;  %v904_v37 = vld [vmem:[#allocation5 + $0x238] sm:$0xff] }
  0xc9   :  { %630 = vmatprep.mubr.f32.mxu0 %v484_v3  ;;  %948 = vmatpush1.msra.mxu0 %v857_v38  ;;  %v481_v52 = vsel %vm399_vm12, %v477_v45, %v478_v33  ;;  %v457_v49 = vsel %vm354_vm10, %v453_v35, %v454_v14  ;;  %v480_v54 = vsel %vm399_vm12, %v478_v33, %v479_v63  ;;  %v910_v63 = vld [vmem:[#allocation5 + $0x268] sm:$0xff]  ;;  %v907_v19 = vld [vmem:[#allocation5 + $0x250] sm:$0xff]  ;;  %v905_v3 = vld [vmem:[#allocation5 + $0x240] sm:$0xff] }
  0xca   :  { %1063 = vmatpush1.msra.mxu1 %v919_v40  ;;  %949 = vmatprep.subr.mxu0 %v856_v56  ;;  %v494_v15 = vmul.f32 %v1909_v59, %v481_v52  ;;  %v470_v1 = vmul.f32 %v1844_v26, %v457_v49  ;;  %v456_v58 = vsel %vm354_vm10, %v454_v14, %v455_v51  ;;  %v846_v51 = vld [vmem:[#allocation5 + $0x68] sm:$0xff]  ;;  %v841_v38 = vld [vmem:[#allocation5 + $0x40] sm:$0xff]  ;;  %v903_v39 = vld [vmem:[#allocation5 + $0x230] sm:$0xff] }
  0xcb   :  { %1064 = vmatprep.subr.mxu1 %v918_v16  ;;  %950 = vmatpush1.msra.mxu0 %v855_v27  ;;  %v840_v40 = vld [vmem:[#allocation5 + $0x38] sm:$0xff]  ;;  %v902_v56 = vld [vmem:[#allocation5 + $0x228] sm:$0xff]  ;;  %v837_v27 = vld [vmem:[#allocation5 + $0x20] sm:$0xff] }
  0xcc   :  { %631 = vmatmul.mubr.f32.gmra.mxu0 %v460_v57  ;;  %1065 = vmatpush1.msra.mxu1 %v917_v43  ;;  %v839_v57 = vld [vmem:[#allocation5 + $0x30] sm:$0xff]  ;;  %v838_v41 = vld [vmem:[#allocation5 + $0x28] sm:$0xff]  ;;  %v900_v16 = vld [vmem:[#allocation5 + $0x218] sm:$0xff] }
  0xcd   :  { %635 = vmatprep.mubr.f32.mxu0 %v492_v20  ;;  %951 = vmatprep.subr.mxu0 %v854_v23  ;;  %v901_v20 = vld [vmem:[#allocation5 + $0x220] sm:$0xff]  ;;  %v899_v33 = vld [vmem:[#allocation5 + $0x210] sm:$0xff]  ;;  %v836_v43 = vld [vmem:[#allocation5 + $0x18] sm:$0xff] }
  0xce   :  { %1066 = vmatprep.subr.mxu1 %v916_v44  ;;  %952 = vmatpush1.msra.mxu0 %v853_v47  ;;  %v898_v23 = vld [vmem:[#allocation5 + $0x208] sm:$0xff]  ;;  %v835_v44 = vld [vmem:[#allocation5 + $0x10] sm:$0xff]  ;;  %v897_v45 = vld [vmem:[#allocation5 + $0x200] sm:$0xff] }
  0xcf   :  { %1067 = vmatpush1.msra.mxu1 %v915_v18  ;;  %953 = vmatprep.subr.mxu0 %v852_v7  ;;  %v833_v47 = vld [vmem:[#allocation5] sm:$0xff]  ;;  %v896_v14 = vld [vmem:[#allocation5 + $0x1f8] sm:$0xff]  ;;  %v895_v18 = vld [vmem:[#allocation5 + $0x1f0] sm:$0xff] }
  0xd0   :  { %636 = vmatmul.mubr.f32.gmra.mxu0 %v468_v46  ;;  %1068 = vmatprep.subr.mxu1 %v914_v30  ;;  %v834_v46 = vld [vmem:[#allocation5 + $0x8] sm:$0xff]  ;;  %v892_v52 = vld [vmem:[#allocation5 + $0x1d8] sm:$0xff]  ;;  %v891_v30 = vld [vmem:[#allocation5 + $0x1d0] sm:$0xff] }
  0xd1   :  { %640 = vmatprep.mubr.f32.mxu0 %v482_v13  ;;  %1118 = vmatprep.mubr.f32.mxu1 %v1724_v21  ;;  %v894_v7 = vld [vmem:[#allocation5 + $0x1e8] sm:$0xff]  ;;  %v893_v13 = vld [vmem:[#allocation5 + $0x1e0] sm:$0xff]  ;;  %v887_v49 = vld [vmem:[#allocation5 + $0x1b0] sm:$0xff] }
  0xd2   :  { %954 = vmatpush1.msra.mxu0 %v851_v60  ;;  %1069 = vmatpush1.msra.mxu1 %v913_v48  ;;  %v890_v35 = vld [vmem:[#allocation5 + $0x1c8] sm:$0xff]  ;;  %v883_v60 = vld [vmem:[#allocation5 + $0x190] sm:$0xff] }
  0xd3   :  { %955 = vmatprep.subr.mxu0 %v850_v61  ;;  %1070 = vmatprep.subr.mxu1 %v912_v62  ;;  %v882_v48 = vld [vmem:[#allocation5 + $0x188] sm:$0xff]  ;;  %v881_v61 = vld [vmem:[#allocation5 + $0x180] sm:$0xff]  ;;  %v880_v62 = vld [vmem:[#allocation5 + $0x178] sm:$0xff] }
  0xd4   :  { %641 = vmatmul.mubr.f32.gmra.mxu0 %v458_v31  ;;  %1071 = vmatpush1.msra.mxu1 %v911_v42  ;;  %v889_v31 = vld [vmem:[#allocation5 + $0x1c0] sm:$0xff]  ;;  %v878_v42 = vld [vmem:[#allocation5 + $0x168] sm:$0xff] }
  0xd5   :  { %645 = vmatprep.mubr.f32.mxu0 %v494_v15  ;;  %956 = vmatpush1.msra.mxu0 %v849_v8  ;;  %v888_v15 = vld [vmem:[#allocation5 + $0x1b8] sm:$0xff]  ;;  %v879_v8 = vld [vmem:[#allocation5 + $0x170] sm:$0xff] }
  0xd6   :  { %957 = vmatprep.subr.mxu0 %v848_v53  ;;  %1072 = vmatprep.subr.mxu1 %v910_v63  ;;  %v877_v53 = vld [vmem:[#allocation5 + $0x160] sm:$0xff]  ;;  %v876_v63 = vld [vmem:[#allocation5 + $0x158] sm:$0xff] }
  0xd7   :  { %958 = vmatpush1.msra.mxu0 %v847_v0  ;;  %1073 = vmatpush1.msra.mxu1 %v909_v9  ;;  %v875_v0 = vld [vmem:[#allocation5 + $0x150] sm:$0xff]  ;;  %v874_v9 = vld [vmem:[#allocation5 + $0x148] sm:$0xff] }
  0xd8   :  { %646 = vmatmul.mubr.f32.gmra.mxu0 %v470_v1  ;;  %959 = vmatprep.subr.mxu0 %v846_v51  ;;  %v886_v1 = vld [vmem:[#allocation5 + $0x1a8] sm:$0xff]  ;;  %v873_v51 = vld [vmem:[#allocation5 + $0x140] sm:$0xff] }
  0xd9   :  { %650 = vmatprep.mubr.f32.mxu0 %v480_v54  ;;  %1074 = vmatprep.subr.mxu1 %v908_v5  ;;  %v885_v54 = vld [vmem:[#allocation5 + $0x1a0] sm:$0xff]  ;;  %v872_v5 = vld [vmem:[#allocation5 + $0x138] sm:$0xff] }
  0xda   :  { %960 = vmatpush1.msra.mxu0 %v845_v10  ;;  %1075 = vmatpush1.msra.mxu1 %v907_v19  ;;  %v871_v10 = vld [vmem:[#allocation5 + $0x130] sm:$0xff]  ;;  %v870_v19 = vld [vmem:[#allocation5 + $0x128] sm:$0xff] }
  0xdb   :  { %961 = vmatprep.subr.mxu0 %v844_v11  ;;  %1076 = vmatprep.subr.mxu1 %v906_v25  ;;  %v869_v11 = vld [vmem:[#allocation5 + $0x120] sm:$0xff]  ;;  %v868_v25 = vld [vmem:[#allocation5 + $0x118] sm:$0xff] }
  0xdc   :  { %651 = vmatmul.mubr.f32.gmra.mxu0 %v456_v58  ;;  %1077 = vmatpush1.msra.mxu1 %v905_v3  ;;  %v884_v58 = vld [vmem:[#allocation5 + $0x198] sm:$0xff]  ;;  %v866_v3 = vld [vmem:[#allocation5 + $0x108] sm:$0xff] }
  0xdd   :  { %962 = vmatpush1.msra.mxu0 %v843_v32  ;;  %1078 = vmatprep.subr.mxu1 %v904_v37  ;;  %v867_v32 = vld [vmem:[#allocation5 + $0x110] sm:$0xff] }
  0xde   :  { %963 = vmatprep.subr.mxu0 %v842_v36  ;;  %1079 = vmatpush1.msra.mxu1 %v903_v39  ;;  %v865_v36 = vld [vmem:[#allocation5 + $0x100] sm:$0xff] }
  0xdf   :  { %964 = vmatpush1.msra.mxu0 %v841_v38  ;;  %1080 = vmatprep.subr.mxu1 %v902_v56  ;;  %v2119_v39 = vld [vmem:[%s2419_s4] ss:$0 sm:$0xff] }
  0xe0   :  { %965 = vmatprep.subr.mxu0 %v840_v40  ;;  %1081 = vmatpush1.msra.mxu1 %v901_v20 }
  0xe1   :  { %966 = vmatpush1.msra.mxu0 %v839_v57  ;;  %1082 = vmatprep.subr.mxu1 %v900_v16 }
  0xe2   :  { %967 = vmatprep.subr.mxu0 %v838_v41  ;;  %1083 = vmatpush1.msra.mxu1 %v899_v33 }
  0xe3   :  { %968 = vmatpush1.msra.mxu0 %v837_v27  ;;  %1084 = vmatprep.subr.mxu1 %v898_v23 }
  0xe4   :  { %969 = vmatprep.subr.mxu0 %v836_v43  ;;  %1085 = vmatpush1.msra.mxu1 %v897_v45 }
  0xe5   :  { %970 = vmatpush1.msra.mxu0 %v835_v44 }
  0xe6   :  { %971 = vmatprep.subr.mxu0 %v834_v46 }
  0xe7   :  { %972 = vmatpush1.msra.mxu0 %v833_v47 }
  0xe8   :  { %973 = vmatprep.subr.mxu0 %v896_v14 }
  0xe9   :  { %974 = vmatpush2.msra.mxu0 %v895_v18 }
  0xea   :  { %975 = vmatprep.subr.mxu0 %v894_v7 }
  0xeb   :  { %976 = vmatpush2.msra.mxu0 %v893_v13 }
  0xec   :  { %977 = vmatprep.subr.mxu0 %v892_v52 }
  0xed   :  { %978 = vmatpush2.msra.mxu0 %v891_v30 }
  0xee   :  { %979 = vmatprep.subr.mxu0 %v890_v35 }
  0xef   :  { %980 = vmatpush2.msra.mxu0 %v889_v31 }
  0xf0   :  { %981 = vmatprep.subr.mxu0 %v888_v15 }
  0xf1   :  { %982 = vmatpush2.msra.mxu0 %v887_v49 }
  0xf2   :  { %983 = vmatprep.subr.mxu0 %v886_v1 }
  0xf3   :  { %984 = vmatpush2.msra.mxu0 %v885_v54 }
  0xf4   :  { %985 = vmatprep.subr.mxu0 %v884_v58 }
  0xf5   :  { %986 = vmatpush2.msra.mxu0 %v883_v60 }
  0xf6   :  { %987 = vmatprep.subr.mxu0 %v882_v48 }
  0xf7   :  { %988 = vmatpush2.msra.mxu0 %v881_v61 }
  0xf8   :  { %989 = vmatprep.subr.mxu0 %v880_v62 }
  0xf9   :  { %990 = vmatpush2.msra.mxu0 %v879_v8 }
  0xfa   :  { %991 = vmatprep.subr.mxu0 %v878_v42 }
  0xfb   :  { %992 = vmatpush2.msra.mxu0 %v877_v53 }
  0xfc   :  { %993 = vmatprep.subr.mxu0 %v876_v63 }
  0xfd   :  { %994 = vmatpush2.msra.mxu0 %v875_v0 }
  0xfe   :  { %995 = vmatprep.subr.mxu0 %v874_v9 }
  0xff   :  { %996 = vmatpush2.msra.mxu0 %v873_v51 }
 0x100   :  { %997 = vmatprep.subr.mxu0 %v872_v5 }
 0x101   :  { %998 = vmatpush2.msra.mxu0 %v871_v10 }
 0x102   :  { %999 = vmatprep.subr.mxu0 %v870_v19 }
 0x103   :  { %1000 = vmatpush2.msra.mxu0 %v869_v11 }
 0x104   :  { %1001 = vmatprep.subr.mxu0 %v868_v25 }
 0x105   :  { %1002 = vmatpush2.msra.mxu0 %v867_v32 }
 0x106   :  { %1003 = vmatprep.subr.mxu0 %v866_v3 }
 0x107   :  { %1004 = vmatpush2.msra.mxu0 %v865_v36 }
 0x17a   :  { %v1561_v38 = vpop.f32.mrf.mxu1 }
 0x17c   :  { %v722_v41 = vpop.f32.mrf.mxu1 }
 0x17e   :  { %v1564_v45 = vpop.f32.mrf.mxu1 }
 0x17f   :  { %v1479_v37 = vpop.f32.mrf.mxu0 }
 0x180   :  { %v732_v30 = vpop.f32.mrf.mxu1 }
 0x181   :  { %v1480_v40 = vpop.f32.mrf.mxu0 }
 0x182   :  { %v1481_v56 = vadd.f32 %v1480_v40, %v1479_v37 }
 0x183   :  { %v1567_v60 = vpop.f32.mrf.mxu1 }
 0x184   :  { %v1482_v57 = vpop.f32.mrf.mxu0  ;;  %v618_v20 = vadd.f32 %v1481_v56, %v2119_v39 }
 0x185   :  { %v742_v0 = vpop.f32.mrf.mxu1 }
 0x186   :  { %v1483_v16 = vpop.f32.mrf.mxu0  ;;  %v723_v27 = vadd.f32 %v722_v41, %v618_v20 }
 0x187   :  { %v1484_v33 = vadd.f32 %v1483_v16, %v1482_v57 }
 0x188   :  { %v1485_v43 = vpop.f32.mrf.mxu0  ;;  %v769_v23 = vmul.f32 0.01, %v723_v27  ;;  %vm761_vm9 = vcmp.gt.f32.partialorder %v723_v27, 0.0  ;;  %v1570_v32 = vpop.f32.mrf.mxu1 }
 0x189   :  { %v623_v44 = vadd.f32 %v1484_v33, %v2119_v39 }
 0x18a   :  { %v1486_v46 = vpop.f32.mrf.mxu0  ;;  %v2123_v18 = vsel %vm761_vm9, %v723_v27, %v769_v23  ;;  %v752_v20 = vpop.f32.mrf.mxu1 }
 0x18b   :  { %v728_v47 = vadd.f32 %v1561_v38, %v623_v44  ;;  %v1487_v14 = vadd.f32 %v1486_v46, %v1485_v43  ;;  %1119 = vmatmul.mubr.f32.vlgmr.msra.gmra.mxu1 %v2123_v18 }
 0x18c   :  { %v1488_v7 = vpop.f32.mrf.mxu0  ;;  %1124 = vmatprep.mubr.f32.mxu1 %v1724_v21 }
 0x18d   :  { %v628_v13 = vadd.f32 %v1487_v14, %v2119_v39  ;;  %vm762_vm11 = vcmp.gt.f32.partialorder %v728_v47, 0.0  ;;  %v770_v52 = vmul.f32 0.01, %v728_v47  ;;  %v785_v14 = vrot.slane %v2123_v18, 6 }
 0x18e   :  { %v1489_v35 = vpop.f32.mrf.mxu0 }
 0x18f   :  { %v733_v31 = vadd.f32 %v732_v30, %v628_v13  ;;  %v1490_v15 = vadd.f32 %v1489_v35, %v1488_v7  ;;  %v2128_v49 = vsel %vm762_vm11, %v728_v47, %v770_v52  ;;  %v809_v7 = vrot.slane %v2123_v18, 7 }
 0x190   :  { %v1491_v1 = vpop.f32.mrf.mxu0  ;;  %1125 = vmatmul.mubr.f32.gmra.mxu1 %v2128_v49  ;;  %v810_v52 = vrot.slane %v2128_v49, 7 }
 0x191   :  { %v633_v54 = vadd.f32 %v1490_v15, %v2119_v39  ;;  %1130 = vmatprep.mubr.f32.mxu1 %v1724_v21  ;;  %vm763_vm13 = vcmp.gt.f32.partialorder %v733_v31, 0.0  ;;  %v771_v58 = vmul.f32 0.01, %v733_v31 }
 0x192   :  { %v1492_v48 = vpop.f32.mrf.mxu0 }
 0x193   :  { %v738_v61 = vadd.f32 %v1564_v45, %v633_v54  ;;  %v1493_v62 = vadd.f32 %v1492_v48, %v1491_v1  ;;  %v2133_v8 = vsel %vm763_vm13, %v733_v31, %v771_v58  ;;  %v786_v1 = vrot.slane %v2128_v49, 6 }
 0x194   :  { %v1494_v42 = vpop.f32.mrf.mxu0  ;;  %1131 = vmatmul.mubr.f32.gmra.mxu1 %v2133_v8  ;;  %v811_v30 = vrot.slane %v2133_v8, 7  ;;  %v787_v18 = vrot.slane %v2133_v8, 6  ;;  %v823_v54 = vsel %vm399_vm12, %v809_v7, %v810_v52 }
 0x195   :  { %v638_v53 = vadd.f32 %v1493_v62, %v2119_v39  ;;  %1136 = vmatprep.mubr.f32.mxu1 %v1724_v21  ;;  %vm764_vm14 = vcmp.gt.f32.partialorder %v738_v61, 0.0  ;;  %v772_v63 = vmul.f32 0.01, %v738_v61 }
 0x196   :  { %v1495_v9 = vpop.f32.mrf.mxu0  ;;  %v822_v58 = vsel %vm399_vm12, %v810_v52, %v811_v30 }
 0x197   :  { %v743_v51 = vadd.f32 %v742_v0, %v638_v53  ;;  %v1496_v5 = vadd.f32 %v1495_v9, %v1494_v42  ;;  %v2138_v10 = vsel %vm764_vm14, %v738_v61, %v772_v63 }
 0x198   :  { %v1497_v19 = vpop.f32.mrf.mxu0  ;;  %1137 = vmatmul.mubr.f32.gmra.mxu1 %v2138_v10  ;;  %v812_v49 = vrot.slane %v2138_v10, 7  ;;  %v788_v62 = vrot.slane %v2138_v10, 6 }
 0x199   :  { %v643_v11 = vadd.f32 %v1496_v5, %v2119_v39  ;;  %1142 = vmatprep.mubr.f32.mxu1 %v1724_v21  ;;  %vm765_vm2 = vcmp.gt.f32.partialorder %v743_v51, 0.0  ;;  %v773_v25 = vmul.f32 0.01, %v743_v51 }
 0x19a   :  { %v1498_v3 = vpop.f32.mrf.mxu0  ;;  %v821_v42 = vsel %vm399_vm12, %v811_v30, %v812_v49  ;;  %v797_v53 = vsel %vm354_vm10, %v787_v18, %v788_v62  ;;  %v1646_v30 = vld [vmem:[%s2415_s0 + $0x18] sm:$0xff] }
 0x19b   :  { %v748_v36 = vadd.f32 %v1567_v60, %v643_v11  ;;  %v1499_v37 = vadd.f32 %v1498_v3, %v1497_v19  ;;  %v2143_v38 = vsel %vm765_vm2, %v743_v51, %v773_v25  ;;  %v799_v60 = vsel %vm354_vm10, %v785_v14, %v786_v1 }
 0x19c   :  { %v1500_v40 = vpop.f32.mrf.mxu0  ;;  %1143 = vmatmul.mubr.f32.gmra.mxu1 %v2143_v38  ;;  %v813_v48 = vrot.slane %v2143_v38, 7  ;;  %v789_v8 = vrot.slane %v2143_v38, 6  ;;  %v1577_v4 = vtrunc.f32 %v1646_v30 }
 0x19d   :  { %v648_v56 = vadd.f32 %v1499_v37, %v2119_v39  ;;  %1148 = vmatprep.mubr.f32.mxu1 %v1724_v21  ;;  %vm766_vm0 = vcmp.gt.f32.partialorder %v748_v36, 0.0  ;;  %v774_v57 = vmul.f32 0.01, %v748_v36 }
 0x19e   :  { %v1501_v41 = vpop.f32.mrf.mxu0 }
 0x19f   :  { %v753_v16 = vadd.f32 %v752_v20, %v648_v56  ;;  %v1502_v27 = vadd.f32 %v1501_v41, %v1500_v40  ;;  %v2148_v33 = vsel %vm766_vm0, %v748_v36, %v774_v57 }
 0x1a0   :  { %1149 = vmatmul.mubr.f32.gmra.mxu1 %v2148_v33  ;;  %v814_v0 = vrot.slane %v2148_v33, 7  ;;  %v790_v5 = vrot.slane %v2148_v33, 6 }
 0x1a1   :  { %v653_v43 = vadd.f32 %v1502_v27, %v2119_v39  ;;  %1154 = vmatprep.mubr.f32.mxu1 %v1724_v21  ;;  %vm767_vm3 = vcmp.gt.f32.partialorder %v753_v16, 0.0  ;;  %v775_v23 = vmul.f32 0.01, %v753_v16 }
 0x1a2   :  { %v819_v19 = vsel %vm399_vm12, %v813_v48, %v814_v0  ;;  %v795_v11 = vsel %vm354_vm10, %v789_v8, %v790_v5 }
 0x1a3   :  { %v758_v44 = vadd.f32 %v1570_v32, %v653_v43  ;;  %v2153_v45 = vsel %vm767_vm3, %v753_v16, %v775_v23  ;;  %vm1415_vm3 = vcmask 0  }
 0x1a4   :  { %1155 = vmatmul.mubr.f32.gmra.mxu1 %v2153_v45  ;;  %v815_v9 = vrot.slane %v2153_v45, 7  ;;  %v791_v10 = vrot.slane %v2153_v45, 6 }
 0x1a5   :  { %1160 = vmatprep.mubr.f32.mxu1 %v1724_v21  ;;  %vm768_vm4 = vcmp.gt.f32.partialorder %v758_v44, 0.0  ;;  %v776_v46 = vmul.f32 0.01, %v758_v44 }
 0x1a7   :  { %v784_v47 = vsel %vm768_vm4, %v758_v44, %v776_v46 }
 0x1a8   :  { %v792_v13 = vrot.slane %v784_v47, 6  ;;  %v816_v39 = vrot.slane %v784_v47, 7  ;;  %1161 = vmatmul.mubr.f32.gmra.mxu1 %v784_v47 }
 0x1aa   :  { %v800_v35 = vsel %vm354_vm10, %v792_v13, %v785_v14  ;;  %v824_v21 = vsel %vm399_vm12, %v816_v39, %v809_v7  ;;  %v817_v3 = vsel %vm399_vm12, %v815_v9, %v816_v39  ;;  %v793_v36 = vsel %vm354_vm10, %v791_v10, %v792_v13 }
 0x1ab   :  { %v801_v31 = vmul.f32 %v1831_v22, %v800_v35  ;;  %v825_v15 = vmul.f32 %v1854_v29, %v824_v21  ;;  %v827_v22 = vmul.f32 %v1891_v50, %v822_v58  ;;  %v798_v29 = vsel %vm354_vm10, %v786_v1, %v787_v18  ;;  %v1647_v35 = vld [vmem:[%s2415_s0 + $0x20] sm:$0xff] }
 0x1ac   :  { %v803_v61 = vmul.f32 %v1837_v24, %v798_v29  ;;  %v820_v50 = vsel %vm399_vm12, %v812_v49, %v813_v48  ;;  %v796_v24 = vsel %vm354_vm10, %v788_v62, %v789_v8  ;;  %v1579_v21 = vtrunc.f32 %v1647_v35 }
 0x1ad   :  { %1005 = vmatprep.mubr.f32.mxu0 %v825_v15  ;;  %v829_v63 = vmul.f32 %v1904_v55, %v820_v50  ;;  %v805_v51 = vmul.f32 %v1850_v28, %v796_v24  ;;  %v818_v55 = vsel %vm399_vm12, %v814_v0, %v815_v9  ;;  %v794_v28 = vsel %vm354_vm10, %v790_v5, %v791_v10 }
 0x1ae   :  { %1006 = vmatmul.mubr.f32.vlgmr.msra.gmra.mxu0 %v801_v31  ;;  %v831_v25 = vmul.f32 %v1909_v59, %v818_v55  ;;  %v807_v32 = vmul.f32 %v1844_v26, %v794_v28  ;;  %v929_v59 = vld [vmem:[%s2421_s6] sm:$0x3]  ;;  %v1578_v1 = vcvt.f32.s32 %v1577_v4  ;;  %v1580_v18 = vcvt.f32.s32 %v1579_v21  ;;  %v1649_v21 = vld [vmem:[%s2415_s0 + $0x38] sm:$0xff] }
 0x1af   :  { %1011 = vmatprep.mubr.f32.mxu0 %v823_v54  ;;  %v2216_v38 = vrot.slane %v929_v59, %v291_v6  ;;  %v2220_v26 = vrot.slane %v929_v59, %v336_v12 }
 0x1b2   :  { %1012 = vmatmul.mubr.f32.gmra.mxu0 %v799_v60 }
 0x1b3   :  { %1017 = vmatprep.mubr.f32.mxu0 %v827_v22 }
 0x1b6   :  { %1018 = vmatmul.mubr.f32.gmra.mxu0 %v803_v61 }
 0x1b7   :  { %1023 = vmatprep.mubr.f32.mxu0 %v821_v42 }
 0x1ba   :  { %1024 = vmatmul.mubr.f32.gmra.mxu0 %v797_v53 }
 0x1bb   :  { %1029 = vmatprep.mubr.f32.mxu0 %v829_v63 }
 0x1be   :  { %1030 = vmatmul.mubr.f32.gmra.mxu0 %v805_v51 }
 0x1bf   :  { %1035 = vmatprep.mubr.f32.mxu0 %v819_v19 }
 0x1c2   :  { %1036 = vmatmul.mubr.f32.gmra.mxu0 %v795_v11 }
 0x1c3   :  { %1041 = vmatprep.mubr.f32.mxu0 %v831_v25 }
 0x1c6   :  { %1042 = vmatmul.mubr.f32.gmra.mxu0 %v807_v32 }
 0x1c7   :  { %1047 = vmatprep.mubr.f32.mxu0 %v817_v3 }
 0x1ca   :  { %1048 = vmatmul.mubr.f32.gmra.mxu0 %v793_v36 }
 0x24b   :  { %v1120_v37 = vpop.f32.mrf.mxu1 }
 0x24d   :  { %v1122_v40 = vpop.f32.mrf.mxu1 }
 0x250   :  { %v1126_v27 = vpop.f32.mrf.mxu1 }
 0x252   :  { %v1128_v46 = vpop.f32.mrf.mxu1 }
 0x254   :  { %v1132_v31 = vpop.f32.mrf.mxu1 }
 0x256   :  { %v1134_v54 = vpop.f32.mrf.mxu1 }
 0x258   :  { %v1138_v60 = vpop.f32.mrf.mxu1 }
 0x25a   :  { %v1140_v29 = vpop.f32.mrf.mxu1 }
 0x25c   :  { %v1144_v48 = vpop.f32.mrf.mxu1 }
 0x25e   :  { %v1146_v62 = vpop.f32.mrf.mxu1 }
 0x260   :  { %v1150_v42 = vpop.f32.mrf.mxu1 }
 0x262   :  { %v1152_v53 = vpop.f32.mrf.mxu1 }
 0x264   :  { %v1156_v9 = vpop.f32.mrf.mxu1 }
 0x266   :  { %v1158_v28 = vpop.f32.mrf.mxu1 }
 0x26e   :  { %v1007_v56 = vpop.f32.mrf.mxu0 }
 0x26f   :  { %v1008_v57 = vadd.f32 %v1007_v56, %v2216_v38 }
 0x270   :  { %v1009_v20 = vpop.f32.mrf.mxu0 }
 0x271   :  { %v2223_v41 = vadd.f32 %v1120_v37, %v1008_v57  ;;  %v1010_v16 = vadd.f32 %v1009_v20, %v2220_v26 }
 0x272   :  { %v1013_v33 = vpop.f32.mrf.mxu0 }
 0x273   :  { %v2226_v43 = vadd.f32 %v1122_v40, %v1010_v16  ;;  %v1014_v6 = vadd.f32 %v1013_v33, %v2216_v38  ;;  %v1330_v44 = vsel %vm1314_vm15, %v2223_v41, 0.0 }
 0x274   :  { %v1015_v23 = vpop.f32.mrf.mxu0 }
 0x275   :  { %v1016_v2 = vadd.f32 %v1015_v23, %v2220_v26  ;;  %v1167_v12 = vmax.f32 %v2223_v41, %v2226_v43  ;;  %v1331_v45 = vsel %vm1315_vm1, %v2226_v43, 0.0  ;;  %v2242_v14 = vadd.f32 %v1126_v27, %v1014_v6  ;;  %v1162_v27 = vpop.f32.mrf.mxu1 }
 0x276   :  { %v2240_v47 = vadd.f32 %v1331_v45, %v1330_v44  ;;  %v1019_v39 = vpop.f32.mrf.mxu0 }
 0x277   :  { %v2244_v7 = vadd.f32 %v1128_v46, %v1016_v2  ;;  %1168 = vmax.xlane.f32.xlu0 %v1167_v12  ;;  %v1020_v0 = vadd.f32 %v1019_v39, %v2216_v38 }
 0x278   :  { %v1021_v52 = vpop.f32.mrf.mxu0 }
 0x279   :  { %v1170_v13 = vmax.f32 %v2242_v14, %v2244_v7  ;;  %v1022_v63 = vadd.f32 %v1021_v52, %v2220_v26  ;;  %v2261_v11 = vadd.f32 %v1132_v31, %v1020_v0  ;;  %v1585_v31 = vtrunc.f32 %v1649_v21 }
 0x27a   :  { %v1025_v15 = vpop.f32.mrf.mxu0 }
 0x27b   :  { %1171 = vmax.xlane.f32.xlu1 %v1170_v13  ;;  %v2257_v5 = vadd.f32 %v1134_v54, %v1022_v63  ;;  %v1026_v19 = vadd.f32 %v1025_v15, %v2216_v38  ;;  %v1164_v13 = vpop.f32.mrf.mxu1 }
 0x27c   :  { %v1027_v58 = vpop.f32.mrf.mxu0 }
 0x27d   :  { %v1028_v51 = vadd.f32 %v1027_v58, %v2220_v26  ;;  %v1173_v37 = vmax.f32 %v2261_v11, %v2257_v5  ;;  %v2272_v40 = vadd.f32 %v1138_v60, %v1026_v19  ;;  %v2311_v60 = vpop.permute.xlu0 %1294 }
 0x27e   :  { %v1031_v22 = vpop.f32.mrf.mxu0  ;;  %vm1317_vm10 = vcmp.eq.s32.totalorder %v1861_v34, %v2311_v60  ;;  %vm1316_vm12 = vcmp.eq.s32.totalorder %v1817_v17, %v2311_v60 }
 0x27f   :  { %v1032_v25 = vadd.f32 %v1031_v22, %v2216_v38  ;;  %v2264_v32 = vadd.f32 %v1140_v29, %v1028_v51  ;;  %v2313_v22 = vpop.permute.xlu1 %1297 }
 0x280   :  { %v1033_v49 = vpop.f32.mrf.mxu0  ;;  %vm1319_vm15 = vcmp.eq.s32.totalorder %v1861_v34, %v2313_v22  ;;  %vm1318_vm6 = vcmp.eq.s32.totalorder %v1817_v17, %v2313_v22 }
 0x281   :  { %v1034_v10 = vadd.f32 %v1033_v49, %v2220_v26  ;;  %v2274_v57 = vadd.f32 %v1144_v48, %v1032_v25  ;;  %v1176_v33 = vmax.f32 %v2272_v40, %v2264_v32 }
 0x282   :  { %v1037_v61 = vpop.f32.mrf.mxu0 }
 0x283   :  { %v2266_v3 = vadd.f32 %v1146_v62, %v1034_v10  ;;  %v1038_v20 = vadd.f32 %v1037_v61, %v2216_v38 }
 0x284   :  { %v1039_v8 = vpop.f32.mrf.mxu0 }
 0x285   :  { %v1040_v36 = vadd.f32 %v1039_v8, %v2220_v26  ;;  %v1179_v12 = vmax.f32 %v2274_v57, %v2266_v3  ;;  %v2287_v44 = vadd.f32 %v1150_v42, %v1038_v20 }
 0x286   :  { %v1043_v50 = vpop.f32.mrf.mxu0 }
 0x287   :  { %v1044_v16 = vadd.f32 %v1043_v50, %v2216_v38  ;;  %v2280_v6 = vadd.f32 %v1152_v53, %v1040_v36 }
 0x288   :  { %v1045_v24 = vpop.f32.mrf.mxu0 }
 0x289   :  { %v1046_v59 = vadd.f32 %v1045_v24, %v2220_v26  ;;  %v2289_v45 = vadd.f32 %v1156_v9, %v1044_v16  ;;  %v1182_v52 = vmax.f32 %v2287_v44, %v2280_v6 }
 0x28a   :  { %v1049_v55 = vpop.f32.mrf.mxu0 }
 0x28b   :  { %v2282_v23 = vadd.f32 %v1158_v28, %v1046_v59  ;;  %v1050_v46 = vadd.f32 %v1049_v55, %v2216_v38  ;;  %v1648_v38 = vld [vmem:[%s2415_s0 + $0x28] sm:$0xff] }
 0x28c   :  { %1300 = vperm.xlu1 %1597, %v1578_v1   ;;  %v1051_v56 = vpop.f32.mrf.mxu0  ;;  %v1581_v35 = vtrunc.f32 %v1648_v38  ;;  %v1586_v1 = vcvt.f32.s32 %v1585_v31 }
 0x28d   :  { %1303 = vperm.xlu0 %1596, %v1580_v18   ;;  %v1052_v2 = vadd.f32 %v1051_v56, %v2220_v26  ;;  %v1185_v26 = vmax.f32 %v2289_v45, %v2282_v23  ;;  %v2298_v30 = vadd.f32 %v1162_v27, %v1050_v46  ;;  %v1650_v18 = vld [vmem:[%s2415_s0 + $0x30] sm:$0xff]  ;;  %s1725_s0 = smov [#allocation7]  }
 0x28e   :  { %v1582_v15 = vcvt.f32.s32 %v1581_v35  ;;  %v1583_v54 = vtrunc.f32 %v1650_v18  ;;  %s1423_s19 = sshll.u32 %s1725_s0, 4  ;;  %s1424_s19 = int_to_ptr.vmem [resolvable:$true] %s1423_s19 }
 0x28f   :  { %v2292_v39 = vadd.f32 %v1164_v13, %v1052_v2  ;;  %s1691_s5 = scalar_lea.vmem %s1424_s19, 16  ;;  %s1695_s20 = scalar_lea.vmem %s1424_s19, 32 }
 0x290   :  { %v1584_v58 = vcvt.f32.s32 %v1583_v54  ;;  %p1692_p10 = scmp.ne.s32.totalorder %s1424_s19, %s1691_s5  ;;  %p1696_p11 = scmp.lt.s32.totalorder %s1424_s19, %s1424_s19 }
 0x291   :  { %v1188_v4 = vmax.f32 %v2298_v30, %v2292_v39  ;;  %p1697_p12 = scmp.lt.s32.totalorder %s1695_s20, %s1691_s5 }
 0x293   :  { %p1698_p13 = por %p1697_p12, %p1696_p11 }
 0x295   :  { %p1699_p0 = pnand %p1698_p13, %p1692_p10 }
 0x2ac   :  { %1174 = vmax.xlane.f32.xlu0 %v1173_v37 }
 0x2b0   :  { %1177 = vmax.xlane.f32.xlu0 %v1176_v33  ;;  %1180 = vmax.xlane.f32.xlu1 %v1179_v12 }
 0x2b4   :  { %1183 = vmax.xlane.f32.xlu0 %v1182_v52  ;;  %1186 = vmax.xlane.f32.xlu1 %v1185_v26 }
 0x2b8   :  { %1189 = vmax.xlane.f32.xlu0 %v1188_v4 }
 0x2c5   :  { %1306 = vperm.xlu1 %1597, %v1582_v15  }
 0x2c9   :  { %1312 = vperm.xlu1 %1597, %v1586_v1  }
 0x2ce   :  { %1309 = vperm.xlu0 %1596, %v1584_v58  }
 0x300   :  { %v2315_v29 = vpop.xlane.xlu0 %1168 }
 0x301   :  { %v1191_v49 = vsub.f32 %v2223_v41, %v2315_v29  ;;  %v1192_v48 = vsub.f32 %v2226_v43, %v2315_v29 }
 0x303   :  { %v1207_v61 = vmul.f32 1.442695, %v1191_v49  ;;  %v1209_v62 = vmul.f32 1.442695, %v1192_v48 }
 0x304   :  { %v2321_v8 = vpop.xlane.xlu1 %1171 }
 0x305   :  { %1598 = vpow2.f32 %v1207_v61  ;;  %v1193_v42 = vsub.f32 %v2242_v14, %v2321_v8  ;;  %v1194_v50 = vsub.f32 %v2244_v7, %v2321_v8 }
 0x306   :  { %1600 = vpow2.f32 %v1209_v62 }
 0x307   :  { %v1211_v53 = vmul.f32 1.442695, %v1193_v42  ;;  %v1213_v63 = vmul.f32 1.442695, %v1194_v50 }
 0x308   :  { %v2327_v10 = vpop.permute.xlu0 %1303  ;;  %v2329_v19 = vpop.permute.xlu1 %1300 }
 0x309   :  { %1602 = vpow2.f32 %v1211_v53  ;;  %vm1320_vm1 = vcmp.eq.s32.totalorder %v1817_v17, %v2329_v19  ;;  %vm1321_vm5 = vcmp.eq.s32.totalorder %v1861_v34, %v2329_v19  ;;  %vm1322_vm7 = vcmp.eq.s32.totalorder %v1817_v17, %v2327_v10 }
 0x30a   :  { %1604 = vpow2.f32 %v1213_v63  ;;  %vm1323_vm8 = vcmp.eq.s32.totalorder %v1861_v34, %v2327_v10  ;;  %v1334_v19 = vsel %vm1318_vm6, %v2261_v11, 0.0 }
 0x30b   :  { %v1339_v10 = vsel %vm1323_vm8, %v2266_v3, 0.0 }
 0x312   :  { %v1599_v41 = vpop.eup %1598 }
 0x313   :  { %v1601_v24 = vpop.eup %1600 }
 0x314   :  { %v1239_v0 = vadd.f32 %v1601_v24, %v1599_v41 }
 0x316   :  { %v1603_v43 = vpop.eup %1602  ;;  %1240 = vadd.xlane.f32.xlu0 %v1239_v0 }
 0x317   :  { %v1605_v9 = vpop.eup %1604 }
 0x318   :  { %v1242_v51 = vadd.f32 %v1605_v9, %v1603_v43 }
 0x31a   :  { %1243 = vadd.xlane.f32.xlu1 %v1242_v51 }
 0x335   :  { %v2331_v55 = vpop.xlane.xlu0 %1174 }
 0x336   :  { %v1195_v25 = vsub.f32 %v2261_v11, %v2331_v55  ;;  %v1196_v28 = vsub.f32 %v2257_v5, %v2331_v55 }
 0x338   :  { %v1215_v36 = vmul.f32 1.442695, %v1195_v25  ;;  %v1217_v59 = vmul.f32 1.442695, %v1196_v28 }
 0x339   :  { %v2337_v37 = vpop.xlane.xlu0 %1177  ;;  %v2339_v56 = vpop.xlane.xlu1 %1180 }
 0x33a   :  { %1606 = vpow2.f32 %v1215_v36  ;;  %v1197_v20 = vsub.f32 %v2272_v40, %v2337_v37  ;;  %v1198_v16 = vsub.f32 %v2264_v32, %v2337_v37  ;;  %v1199_v27 = vsub.f32 %v2274_v57, %v2339_v56 }
 0x33b   :  { %1608 = vpow2.f32 %v1217_v59  ;;  %v1200_v33 = vsub.f32 %v2266_v3, %v2339_v56 }
 0x33c   :  { %v1219_v2 = vmul.f32 1.442695, %v1197_v20  ;;  %v1221_v12 = vmul.f32 1.442695, %v1198_v16  ;;  %v1223_v46 = vmul.f32 1.442695, %v1199_v27 }
 0x33d   :  { %v1225_v13 = vmul.f32 1.442695, %v1200_v33  ;;  %v2349_v52 = vpop.xlane.xlu0 %1183  ;;  %v2351_v26 = vpop.xlane.xlu1 %1186 }
 0x33e   :  { %1610 = vpow2.f32 %v1219_v2  ;;  %v1201_v4 = vsub.f32 %v2287_v44, %v2349_v52  ;;  %v1202_v38 = vsub.f32 %v2280_v6, %v2349_v52  ;;  %v1203_v35 = vsub.f32 %v2289_v45, %v2351_v26 }
 0x33f   :  { %1612 = vpow2.f32 %v1221_v12  ;;  %v1204_v21 = vsub.f32 %v2282_v23, %v2351_v26  ;;  %v1333_v2 = vsel %vm1317_vm10, %v2244_v7, 0.0  ;;  %v1332_v12 = vsel %vm1316_vm12, %v2242_v14, 0.0 }
 0x340   :  { %1614 = vpow2.f32 %v1223_v46  ;;  %v1227_v31 = vmul.f32 1.442695, %v1201_v4  ;;  %v1229_v15 = vmul.f32 1.442695, %v1202_v38  ;;  %v1231_v1 = vmul.f32 1.442695, %v1203_v35 }
 0x341   :  { %1616 = vpow2.f32 %v1225_v13  ;;  %v1233_v18 = vmul.f32 1.442695, %v1204_v21  ;;  %v2361_v54 = vpop.xlane.xlu0 %1189  ;;  %v1307_v33 = vpop.permute.xlu1 %1306  ;;  %v1335_v46 = vsel %vm1319_vm15, %v2257_v5, 0.0  ;;  %v1349_v7 = vadd.f32 %v1333_v2, %v1332_v12 }
 0x342   :  { %1618 = vpow2.f32 %v1227_v31  ;;  %v1205_v58 = vsub.f32 %v2298_v30, %v2361_v54  ;;  %v1206_v49 = vsub.f32 %v2292_v39, %v2361_v54  ;;  %v1336_v13 = vsel %vm1320_vm1, %v2272_v40, 0.0 }
 0x343   :  { %1620 = vpow2.f32 %v1229_v15  ;;  %v1337_v14 = vsel %vm1321_vm5, %v2264_v32, 0.0  ;;  %vm1324_vm9 = vcmp.eq.s32.totalorder %v1817_v17, %v1307_v33  ;;  %vm1325_vm11 = vcmp.eq.s32.totalorder %v1861_v34, %v1307_v33 }
 0x344   :  { %1622 = vpow2.f32 %v1231_v1  ;;  %v1235_v48 = vmul.f32 1.442695, %v1205_v58  ;;  %v1237_v61 = vmul.f32 1.442695, %v1206_v49  ;;  %v1352_v5 = vadd.f32 %v1335_v46, %v1334_v19 }
 0x345   :  { %1624 = vpow2.f32 %v1233_v18  ;;  %v1313_v22 = vpop.permute.xlu1 %1312  ;;  %v1338_v4 = vsel %vm1322_vm7, %v2274_v57, 0.0  ;;  %v1340_v11 = vsel %vm1324_vm9, %v2287_v44, 0.0  ;;  %v1341_v32 = vsel %vm1325_vm11, %v2280_v6, 0.0 }
 0x346   :  { %1626 = vpow2.f32 %v1235_v48  ;;  %vm1328_vm2 = vcmp.eq.s32.totalorder %v1817_v17, %v1313_v22  ;;  %vm1329_vm0 = vcmp.eq.s32.totalorder %v1861_v34, %v1313_v22  ;;  %v1358_v40 = vadd.f32 %v1339_v10, %v1338_v4 }
 0x347   :  { %v1607_v62 = vpop.eup %1606  ;;  %1628 = vpow2.f32 %v1237_v61  ;;  %v1361_v38 = vadd.f32 %v1341_v32, %v1340_v11  ;;  %v1344_v35 = vsel %vm1328_vm2, %v2298_v30, 0.0  ;;  %v1345_v21 = vsel %vm1329_vm0, %v2292_v39, 0.0 }
 0x348   :  { %v1609_v42 = vpop.eup %1608  ;;  %v1367_v6 = vadd.f32 %v1345_v21, %v1344_v35 }
 0x349   :  { %v1245_v50 = vadd.f32 %v1609_v42, %v1607_v62  ;;  %v1310_v60 = vpop.permute.xlu0 %1309 }
 0x34a   :  { %vm1326_vm13 = vcmp.eq.s32.totalorder %v1817_v17, %v1310_v60  ;;  %vm1327_vm14 = vcmp.eq.s32.totalorder %v1861_v34, %v1310_v60 }
 0x34b   :  { %v1611_v53 = vpop.eup %1610  ;;  %1246 = vadd.xlane.f32.xlu0 %v1245_v50  ;;  %v1342_v57 = vsel %vm1326_vm13, %v2289_v45, 0.0  ;;  %v1343_v3 = vsel %vm1327_vm14, %v2282_v23, 0.0 }
 0x34c   :  { %v1613_v63 = vpop.eup %1612  ;;  %v1364_v31 = vadd.f32 %v1343_v3, %v1342_v57 }
 0x34d   :  { %v1615_v41 = vpop.eup %1614  ;;  %v1248_v24 = vadd.f32 %v1613_v63, %v1611_v53 }
 0x34e   :  { %v1617_v0 = vpop.eup %1616 }
 0x34f   :  { %v1619_v43 = vpop.eup %1618  ;;  %1249 = vadd.xlane.f32.xlu0 %v1248_v24  ;;  %v1251_v9 = vadd.f32 %v1617_v0, %v1615_v41 }
 0x350   :  { %v1621_v51 = vpop.eup %1620 }
 0x351   :  { %v1623_v25 = vpop.eup %1622  ;;  %1252 = vadd.xlane.f32.xlu1 %v1251_v9  ;;  %v1254_v28 = vadd.f32 %v1621_v51, %v1619_v43 }
 0x352   :  { %v1625_v36 = vpop.eup %1624 }
 0x353   :  { %v1627_v59 = vpop.eup %1626  ;;  %1255 = vadd.xlane.f32.xlu0 %v1254_v28  ;;  %v1257_v20 = vadd.f32 %v1625_v36, %v1623_v25 }
 0x354   :  { %v1629_v16 = vpop.eup %1628 }
 0x355   :  { %1258 = vadd.xlane.f32.xlu1 %v1257_v20  ;;  %v1260_v27 = vadd.f32 %v1629_v16, %v1627_v59 }
 0x357   :  { %1261 = vadd.xlane.f32.xlu0 %v1260_v27 }
 0x359   :  { %1347 = vadd.xlane.f32.xlu1 %v2240_v47  ;;  %v1355_v47 = vadd.f32 %v1337_v14, %v1336_v13 }
 0x35b   :  { %1350 = vadd.xlane.f32.xlu0 %v1349_v7 }
 0x35d   :  { %1353 = vadd.xlane.f32.xlu1 %v1352_v5 }
 0x35f   :  { %1356 = vadd.xlane.f32.xlu0 %v1355_v47 }
 0x361   :  { %1359 = vadd.xlane.f32.xlu1 %v1358_v40 }
 0x363   :  { %1362 = vadd.xlane.f32.xlu0 %v1361_v38 }
 0x365   :  { %1365 = vadd.xlane.f32.xlu1 %v1364_v31 }
 0x367   :  { %1368 = vadd.xlane.f32.xlu0 %v1367_v6 }
 0x39f   :  { %v1241_v17 = vpop.xlane.xlu0 %1240 }
 0x3a0   :  { %1630 = vlog2.f32 %v1241_v17 }
 0x3a3   :  { %v1244_v44 = vpop.xlane.xlu1 %1243 }
 0x3a4   :  { %1632 = vlog2.f32 %v1244_v44 }
 0x3ad   :  { %v1631_v39 = vpop.eup %1630 }
 0x3ae   :  { %v1264_v49 = vmul.f32 0.6931472, %v1631_v39 }
 0x3b1   :  { %v1633_v18 = vpop.eup %1632 }
 0x3b2   :  { %v1266_v42 = vmul.f32 0.6931472, %v1633_v18 }
 0x3d4   :  { %v1247_v34 = vpop.xlane.xlu0 %1246 }
 0x3d5   :  { %1634 = vlog2.f32 %v1247_v34 }
 0x3d8   :  { %v1250_v45 = vpop.xlane.xlu0 %1249 }
 0x3d9   :  { %1636 = vlog2.f32 %v1250_v45 }
 0x3da   :  { %v1253_v23 = vpop.xlane.xlu1 %1252 }
 0x3db   :  { %1638 = vlog2.f32 %v1253_v23 }
 0x3dc   :  { %v1256_v15 = vpop.xlane.xlu0 %1255 }
 0x3dd   :  { %1640 = vlog2.f32 %v1256_v15 }
 0x3de   :  { %v1259_v30 = vpop.xlane.xlu1 %1258 }
 0x3df   :  { %1642 = vlog2.f32 %v1259_v30 }
 0x3e0   :  { %v1262_v1 = vpop.xlane.xlu0 %1261 }
 0x3e1   :  { %1644 = vlog2.f32 %v1262_v1 }
 0x3e2   :  { %v1348_v58 = vpop.xlane.xlu1 %1347  ;;  %v1635_v61 = vpop.eup %1634 }
 0x3e3   :  { %v1370_v48 = vsub.f32 %v1348_v58, %v2315_v29  ;;  %v1268_v24 = vmul.f32 0.6931472, %v1635_v61 }
 0x3e4   :  { %v1351_v62 = vpop.xlane.xlu0 %1350 }
 0x3e5   :  { %v1378_v50 = vsub.f32 %v1370_v48, %v1264_v49  ;;  %v1371_v53 = vsub.f32 %v1351_v62, %v2321_v8 }
 0x3e6   :  { %v1354_v63 = vpop.xlane.xlu1 %1353  ;;  %v1637_v41 = vpop.eup %1636 }
 0x3e7   :  { %v1386_v0 = vmax.f32 %v1378_v50, -11.512925  ;;  %v1379_v43 = vsub.f32 %v1371_v53, %v1266_v42  ;;  %v1372_v9 = vsub.f32 %v1354_v63, %v2331_v55  ;;  %v1270_v59 = vmul.f32 0.6931472, %v1637_v41 }
 0x3e8   :  { %v1639_v51 = vpop.eup %1638  ;;  %v1357_v25 = vpop.xlane.xlu0 %1356 }
 0x3e9   :  { %v1387_v28 = vmax.f32 %v1379_v43, -11.512925  ;;  %v1380_v36 = vsub.f32 %v1372_v9, %v1268_v24  ;;  %v1272_v20 = vmul.f32 0.6931472, %v1639_v51  ;;  %v1373_v29 = vsub.f32 %v1357_v25, %v2337_v37 }
 0x3ea   :  { %v1360_v16 = vpop.xlane.xlu1 %1359  ;;  %v1641_v27 = vpop.eup %1640  ;;  %v1394_v33 = vmin.f32 %v1386_v0, -1.000005e-05 }
 0x3eb   :  { %v1395_v2 = vmin.f32 %v1387_v28, -1.000005e-05  ;;  %v1388_v8 = vmax.f32 %v1380_v36, -11.512925  ;;  %v1374_v12 = vsub.f32 %v1360_v16, %v2339_v56  ;;  %v1381_v7 = vsub.f32 %v1373_v29, %v1270_v59 }
 0x3ec   :  { %v1643_v46 = vpop.eup %1642  ;;  %v1363_v60 = vpop.xlane.xlu0 %1362  ;;  %v1274_v5 = vmul.f32 0.6931472, %v1641_v27 }
 0x3ed   :  { %v1402_v19 = vadd.f32 %v1395_v2, %v1394_v33  ;;  %v1396_v55 = vmin.f32 %v1388_v8, -1.000005e-05  ;;  %v1382_v13 = vsub.f32 %v1374_v12, %v1272_v20  ;;  %v1389_v22 = vmax.f32 %v1381_v7, -11.512925 }
 0x3ee   :  { %v1645_v14 = vpop.eup %1644  ;;  %v1375_v4 = vsub.f32 %v1363_v60, %v2349_v52  ;;  %v1366_v10 = vpop.xlane.xlu1 %1365  ;;  %v1276_v37 = vmul.f32 0.6931472, %v1643_v46 }
 0x3ef   :  { %v1403_v47 = vadd.f32 %v1402_v19, %v1396_v55  ;;  %v1390_v11 = vmax.f32 %v1382_v13, -11.512925  ;;  %v1376_v32 = vsub.f32 %v1366_v10, %v2351_v26  ;;  %v1397_v40 = vmin.f32 %v1389_v22, -1.000005e-05 }
 0x3f0   :  { %v1383_v57 = vsub.f32 %v1375_v4, %v1274_v5  ;;  %v1369_v56 = vpop.xlane.xlu0 %1368  ;;  %v1278_v3 = vmul.f32 0.6931472, %v1645_v14 }
 0x3f1   :  { %v1384_v38 = vsub.f32 %v1376_v32, %v1276_v37  ;;  %v1377_v35 = vsub.f32 %v1369_v56, %v2361_v54  ;;  %v1404_v21 = vadd.f32 %v1403_v47, %v1397_v40  ;;  %v1398_v31 = vmin.f32 %v1390_v11, -1.000005e-05 }
 0x3f2   :  { %v1391_v6 = vmax.f32 %v1383_v57, -11.512925 }
 0x3f3   :  { %v1392_v17 = vmax.f32 %v1384_v38, -11.512925  ;;  %v1385_v44 = vsub.f32 %v1377_v35, %v1278_v3  ;;  %v1405_v34 = vadd.f32 %v1404_v21, %v1398_v31 }
 0x3f4   :  { %v1399_v52 = vmin.f32 %v1391_v6, -1.000005e-05 }
 0x3f5   :  { %v1393_v45 = vmax.f32 %v1385_v44, -11.512925  ;;  %v1400_v15 = vmin.f32 %v1392_v17, -1.000005e-05 }
 0x3f6   :  { %v1406_v23 = vadd.f32 %v1405_v34, %v1399_v52 }
 0x3f7   :  { %v1401_v30 = vmin.f32 %v1393_v45, -1.000005e-05 }
 0x3f8   :  { %v1407_v39 = vadd.f32 %v1406_v23, %v1400_v15 }
 0x3fa   :  { %v1408_v26 = vadd.f32 %v1407_v39, %v1401_v30 }
 0x3fc   :  { %v1409_v1 = vrot.slane %v1408_v26, 4 }
 0x3fe   :  { %v1410_v18 = vadd.f32 %v1409_v1, %v1408_v26 }
 0x400   :  { %v1411_v58 = vrot.slane %v1410_v18, 2 }
 0x402   :  { %v1412_v49 = vadd.f32 %v1411_v58, %v1410_v18 }
 0x404   :  { %v1413_v54 = vrot.slane %v1412_v49, 1 }
 0x406   :  { %v1414_v48 = vadd.f32 %v1413_v54, %v1412_v49 }
 0x408   :  { %1416 = vst.msk [vmem:[#allocation7] sm:$0x1] %vm1415_vm3, %v1414_v48 }
 0x409   :  { %1702 = shalt.err (!%p1699_p0)
}
 0x40a   :  { %1426 = dma.vmem_to_hbm [thread:$0]  %s1424_s19, 16, %s2422_s7, [#allocation4]  }
 0x40b   :  { %1715 = dma.done.wait [#allocation4], 16  }
 0x40c   :  { %1716 = vsyncadd [#allocation4], 4294967280 }
 0x40d   :  { %1430 = vsyncpa [#allocation3], 1 }
 0x40e   :  { %1431 = vsyncpa [#allocation6], 1 }
 0x40f   :  { %1432 = vsyncpa [#allocation4], 1 }

</bundles_post_ra>
